<compile_context>
chip_gen: v6e
topology: v6e:2x2x1
jax: 0.10.0
libtpu: 0.0.40
codegen_flags: <defaults>
</compile_context>

<pallas_src>
import math

import jax
import jax.numpy as jnp
from jax.experimental import pallas as pl
from jax.experimental.pallas import tpu as pltpu

INPUT_DIM = 784
H_DIM = 200
Z_DIM = 20


def _make_vae_kernel(sigmoid_in_bf16: bool):
    def _vae_kernel(x_ref, eps_ref,
                    w1_ref, b1_ref,
                    wms_ref, bms_ref,
                    w3_ref, b3_ref,
                    w4_ref, b4_ref,
                    xrec_ref, ms_ref):
        x = x_ref[...]  # (TB, 784) bf16

        # ---- encode: 784 -> 200, ReLU (elementwise in f32) ----
        h = jnp.dot(x, w1_ref[...], preferred_element_type=jnp.float32) + b1_ref[...]
        h = jnp.maximum(h, 0.0)

        # ---- fused mu/sigma head: 200 -> 40 (one lane-dense output) ----
        ms = jnp.dot(h.astype(jnp.bfloat16), wms_ref[...],
                     preferred_element_type=jnp.float32) + bms_ref[...]
        mu = ms[:, :Z_DIM]
        sigma = ms[:, Z_DIM:]

        # ---- reparameterize (f32) ----
        z = mu + sigma * eps_ref[...]

        # ---- decode: 20 -> 200, ReLU ----
        h2 = jnp.dot(z.astype(jnp.bfloat16), w3_ref[...],
                     preferred_element_type=jnp.float32) + b3_ref[...]
        h2 = jnp.maximum(h2, 0.0)

        # ---- decode: 200 -> 784, sigmoid, bf16 writeback ----
        logits = jnp.dot(h2.astype(jnp.bfloat16), w4_ref[...],
                         preferred_element_type=jnp.float32) + b4_ref[...]
        if sigmoid_in_bf16:
            logits = logits.astype(jnp.bfloat16)      # EUP bf16 path (v6e/v7x)
        xrec_ref[...] = jax.nn.sigmoid(logits).astype(xrec_ref.dtype)
        ms_ref[...] = ms.astype(ms_ref.dtype)

    return _vae_kernel


def _round_up(n, m):
    return ((n + m - 1) // m) * m


def _default_sigmoid_in_bf16():
    # v5e/v5p VPU/EUP have no bf16 path, keep elementwise in f32 there.
    try:
        kind = jax.devices()[0].device_kind.lower()
    except Exception:
        return True
    return "v5" not in kind


def vae_forward(x, eps, kparams, *, batch_tile=1024, sigmoid_in_bf16=None):
    """x: (B, 784), eps: (B, 20). kparams: kernel-ready params (prepare_kernel_params).

    Returns (x_reconstructed[bf16], mu[f32], sigma[f32])."""
    if sigmoid_in_bf16 is None:
        sigmoid_in_bf16 = _default_sigmoid_in_bf16()

    B = x.shape[0]

    # Batch tile: multiple of 16 (bf16 sublane packing), capped at batch_tile.
    TB = min(batch_tile, _round_up(B, 16))
    # Give v7x's two TensorCores at least 2 grid steps when the batch allows.
    if _round_up(B, TB) // TB < 2 and TB >= 32:
        TB = _round_up((TB + 1) // 2, 16)
    Bp = _round_up(B, TB)
    if Bp != B:
        x = jnp.pad(x, ((0, Bp - B), (0, 0)))
        eps = jnp.pad(eps, ((0, Bp - B), (0, 0)))

    # bf16 input halves the per-tile HBM->VMEM DMA for x (it is an MXU operand anyway).
    x = x.astype(jnp.bfloat16)
    eps = eps.astype(jnp.float32)

    grid = (Bp // TB,)

    def batch_block(feat):
        return pl.BlockSpec((TB, feat), lambda i: (i, 0))

    def resident(arr):
        # Full-array block with a constant index_map -> DMA'd once, stays in VMEM.
        return pl.BlockSpec(arr.shape, lambda i: (0, 0))

    args = (
        x, eps,
        kparams["w1"], kparams["b1"],
        kparams["wms"], kparams["bms"],
        kparams["w3"], kparams["b3"],
        kparams["w4"], kparams["b4"],
    )
    in_specs = [
        batch_block(INPUT_DIM),          # x
        batch_block(Z_DIM),              # eps
        resident(kparams["w1"]), resident(kparams["b1"]),
        resident(kparams["wms"]), resident(kparams["bms"]),
        resident(kparams["w3"]), resident(kparams["b3"]),
        resident(kparams["w4"]), resident(kparams["b4"]),
    ]
    out_shapes = (
        jax.ShapeDtypeStruct((Bp, INPUT_DIM), jnp.bfloat16),   # x_reconstructed (bf16 writeback)
        jax.ShapeDtypeStruct((Bp, 2 * Z_DIM), jnp.float32),    # fused [mu | sigma]
    )
    out_specs = (batch_block(INPUT_DIM), batch_block(2 * Z_DIM))

    # ---- VMEM budget: weights (resident) + double-buffered I/O blocks + f32 temporaries ----
    weight_vmem = (2 * (INPUT_DIM * H_DIM + H_DIM * 2 * Z_DIM
                        + Z_DIM * H_DIM + H_DIM * INPUT_DIM)
                   + 4 * (H_DIM + 2 * Z_DIM + H_DIM + INPUT_DIM))
    io_vmem = 2 * TB * (INPUT_DIM * 2 + Z_DIM * 4        # x (bf16), eps (f32)  in
                        + INPUT_DIM * 2 + 2 * Z_DIM * 4)  # xrec (bf16), ms (f32) out
    interm_vmem = TB * 4 * (H_DIM + 2 * Z_DIM + Z_DIM + H_DIM + INPUT_DIM)
    vmem_limit = max(32 << 20, int(1.5 * (weight_vmem + io_vmem + interm_vmem)))
    vmem_limit = min(vmem_limit, 100 << 20)

    flops_per_row = 2 * (INPUT_DIM * H_DIM + H_DIM * 2 * Z_DIM
                         + Z_DIM * H_DIM + H_DIM * INPUT_DIM)
    hbm_bytes = (weight_vmem
                 + Bp * (INPUT_DIM * 2 + Z_DIM * 4)           # inputs
                 + Bp * (INPUT_DIM * 2 + 2 * Z_DIM * 4))       # outputs
    cost = pl.CostEstimate(
        flops=flops_per_row * Bp,
        transcendentals=Bp * INPUT_DIM,                        # sigmoid exp
        bytes_accessed=hbm_bytes,
    )

    xrec, ms = pl.pallas_call(
        _make_vae_kernel(sigmoid_in_bf16),
        out_shape=out_shapes,
        grid=grid,
        in_specs=in_specs,
        out_specs=out_specs,
        compiler_params=pltpu.CompilerParams(
            dimension_semantics=("parallel",),
            vmem_limit_bytes=vmem_limit,
        ),
        cost_estimate=cost,
    )(*args)

    # Slice mu/sigma from the fused lane-dense output in the wrapper (negligible cost).
    # Do NOT cast xrec back to f32 here: that would add an extra HBM pass.
    return xrec[:B], ms[:B, :Z_DIM], ms[:B, Z_DIM:]


def init_params(key):
    """Deterministic init mirroring nn.Linear's U(-1/sqrt(fan_in), 1/sqrt(fan_in)).

    Weights are stored as (in, out) = transpose of torch's (out, in)."""
    def linear(key, fan_in, fan_out):
        kw, kb = jax.random.split(key)
        bound = 1.0 / math.sqrt(fan_in)
        w = jax.random.uniform(kw, (fan_in, fan_out), jnp.float32, -bound, bound)
        b = jax.random.uniform(kb, (1, fan_out), jnp.float32, -bound, bound)
        return w, b

    k1, k2, k3, k4, k5 = jax.random.split(key, 5)
    w1, b1 = linear(k1, INPUT_DIM, H_DIM)      # img_2hid
    wmu, bmu = linear(k2, H_DIM, Z_DIM)        # hid_2mu
    wsig, bsig = linear(k3, H_DIM, Z_DIM)      # hid_2sigma
    w3, b3 = linear(k4, Z_DIM, H_DIM)          # z_2hid
    w4, b4 = linear(k5, H_DIM, INPUT_DIM)      # hid_2img
    return dict(w1=w1, b1=b1, wmu=wmu, bmu=bmu, wsig=wsig, bsig=bsig,
                w3=w3, b3=b3, w4=w4, b4=b4)


def prepare_kernel_params(p):
    """Fuse mu/sigma heads and cast MXU operands to bf16 (biases stay f32)."""
    return dict(
        w1=p["w1"].astype(jnp.bfloat16),
        b1=p["b1"].astype(jnp.float32),
        wms=jnp.concatenate([p["wmu"], p["wsig"]], axis=1).astype(jnp.bfloat16),
        bms=jnp.concatenate([p["bmu"], p["bsig"]], axis=1).astype(jnp.float32),
        w3=p["w3"].astype(jnp.bfloat16),
        b3=p["b3"].astype(jnp.float32),
        w4=p["w4"].astype(jnp.bfloat16),
        b4=p["b4"].astype(jnp.float32),
    )


def reference_forward(x, eps, kp, *, sigmoid_in_bf16):
    """Plain-JAX reference with the same bf16-operand / f32-accumulate numerics."""
    f32 = jnp.float32
    xb = x.astype(jnp.bfloat16)
    h = jnp.maximum(jnp.dot(xb, kp["w1"], preferred_element_type=f32) + kp["b1"], 0.0)
    ms = jnp.dot(h.astype(jnp.bfloat16), kp["wms"], preferred_element_type=f32) + kp["bms"]
    mu, sigma = ms[:, :Z_DIM], ms[:, Z_DIM:]
    z = mu + sigma * eps
    h2 = jnp.maximum(jnp.dot(z.astype(jnp.bfloat16), kp["w3"],
                             preferred_element_type=f32) + kp["b3"], 0.0)
    logits = jnp.dot(h2.astype(jnp.bfloat16), kp["w4"],
                     preferred_element_type=f32) + kp["b4"]
    if sigmoid_in_bf16:
        logits = logits.astype(jnp.bfloat16)
    xrec = jax.nn.sigmoid(logits).astype(jnp.bfloat16)
    return xrec, mu, sigma


if __name__ == "__main__":
    key = jax.random.PRNGKey(0)
    kp_key, kx, ke = jax.random.split(key, 3)

    B = 8
    params = init_params(kp_key)
    kparams = prepare_kernel_params(params)

    x = jax.random.uniform(kx, (B, INPUT_DIM), jnp.float32)    # MNIST-like pixels in [0,1)
    eps = jax.random.normal(ke, (B, Z_DIM), jnp.float32)       # torch.randn_like(sigma)

    use_bf16_sigmoid = _default_sigmoid_in_bf16()
    xrec, mu, sigma = vae_forward(x, eps, kparams, sigmoid_in_bf16=use_bf16_sigmoid)
    jax.block_until_ready((xrec, mu, sigma))

    # sanity check against a plain-JAX reference with matching numerics
    xrec_r, mu_r, sigma_r = reference_forward(x, eps, kparams,
                                              sigmoid_in_bf16=use_bf16_sigmoid)
    assert xrec.shape == (B, INPUT_DIM) and mu.shape == (B, Z_DIM) and sigma.shape == (B, Z_DIM)
    assert xrec.dtype == jnp.bfloat16
    # bf16 reconstruction: ~3 decimal digits -> loosened tolerance
    assert jnp.allclose(xrec.astype(jnp.float32), xrec_r.astype(jnp.float32),
                        atol=2e-2, rtol=2e-2), "x_reconstructed mismatch"
    assert jnp.allclose(mu, mu_r, atol=1e-4, rtol=1e-4), "mu mismatch"
    assert jnp.allclose(sigma, sigma_r, atol=1e-4, rtol=1e-4), "sigma mismatch"

    print("KERNEL_OK")
</pallas_src>

<mosaic_0001>
module attributes {stable_mosaic.version = 11 : i64} {
  func.func @_vae_kernel(%arg0: i32, %arg1: memref<16x784xbf16, #tpu.memory_space<vmem>>, %arg2: memref<16x20xf32, #tpu.memory_space<vmem>>, %arg3: memref<784x200xbf16, #tpu.memory_space<vmem>>, %arg4: memref<1x200xf32, #tpu.memory_space<vmem>>, %arg5: memref<200x40xbf16, #tpu.memory_space<vmem>>, %arg6: memref<1x40xf32, #tpu.memory_space<vmem>>, %arg7: memref<20x200xbf16, #tpu.memory_space<vmem>>, %arg8: memref<1x200xf32, #tpu.memory_space<vmem>>, %arg9: memref<200x784xbf16, #tpu.memory_space<vmem>>, %arg10: memref<1x784xf32, #tpu.memory_space<vmem>>, %arg11: memref<16x784xbf16, #tpu.memory_space<vmem>>, %arg12: memref<16x40xf32, #tpu.memory_space<vmem>>) attributes {dimension_semantics = [#tpu.dimension_semantics<parallel>], iteration_bounds = array<i64: 1>, scalar_prefetch = 0 : i64, scratch_operands = 0 : i64, tpu.core_type = #tpu.core_type<tc>, window_params = [{transform_indices = @transform_0, window_bounds = array<i64: 16, 784>}, {transform_indices = @transform_1, window_bounds = array<i64: 16, 20>}, {pipeline_mode = #tpu.pipeline_mode<synchronous>, transform_indices = @transform_2, window_bounds = array<i64: 784, 200>}, {pipeline_mode = #tpu.pipeline_mode<synchronous>, transform_indices = @transform_3, window_bounds = array<i64: 1, 200>}, {pipeline_mode = #tpu.pipeline_mode<synchronous>, transform_indices = @transform_4, window_bounds = array<i64: 200, 40>}, {pipeline_mode = #tpu.pipeline_mode<synchronous>, transform_indices = @transform_5, window_bounds = array<i64: 1, 40>}, {pipeline_mode = #tpu.pipeline_mode<synchronous>, transform_indices = @transform_6, window_bounds = array<i64: 20, 200>}, {pipeline_mode = #tpu.pipeline_mode<synchronous>, transform_indices = @transform_7, window_bounds = array<i64: 1, 200>}, {pipeline_mode = #tpu.pipeline_mode<synchronous>, transform_indices = @transform_8, window_bounds = array<i64: 200, 784>}, {pipeline_mode = #tpu.pipeline_mode<synchronous>, transform_indices = @transform_9, window_bounds = array<i64: 1, 784>}, {transform_indices = @transform_10, window_bounds = array<i64: 16, 784>}, {transform_indices = @transform_11, window_bounds = array<i64: 16, 40>}]} {
    %c0 = arith.constant 0 : index
    %c0_0 = arith.constant 0 : index
    %0 = vector.load %arg1[%c0, %c0_0] : memref<16x784xbf16, #tpu.memory_space<vmem>>, vector<16x784xbf16>
    %c0_1 = arith.constant 0 : index
    %c0_2 = arith.constant 0 : index
    %1 = vector.load %arg3[%c0_1, %c0_2] : memref<784x200xbf16, #tpu.memory_space<vmem>>, vector<784x200xbf16>
    %cst = arith.constant dense<0.000000e+00> : vector<16x200xf32>
    %2 = tpu.matmul %0, %1, %cst {dimension_numbers = #tpu.dot_dimension_numbers<[1], [0], [0], [1], [0, 0, 1, 1], [], []>} : vector<16x784xbf16>, vector<784x200xbf16>, vector<16x200xf32> -> vector<16x200xf32>
    %c0_3 = arith.constant 0 : index
    %c0_4 = arith.constant 0 : index
    %3 = vector.load %arg4[%c0_3, %c0_4] : memref<1x200xf32, #tpu.memory_space<vmem>>, vector<1x200xf32>
    %4 = vector.broadcast %3 : vector<1x200xf32> to vector<16x200xf32>
    %5 = arith.addf %2, %4 : vector<16x200xf32>
    %cst_5 = arith.constant 0.000000e+00 : f32
    %6 = vector.broadcast %cst_5 : f32 to vector<16x200xf32>
    %7 = arith.maximumf %5, %6 : vector<16x200xf32>
    %8 = arith.truncf %7 : vector<16x200xf32> to vector<16x200xbf16>
    %c0_6 = arith.constant 0 : index
    %c0_7 = arith.constant 0 : index
    %9 = vector.load %arg5[%c0_6, %c0_7] : memref<200x40xbf16, #tpu.memory_space<vmem>>, vector<200x40xbf16>
    %cst_8 = arith.constant dense<0.000000e+00> : vector<16x40xf32>
    %10 = tpu.matmul %8, %9, %cst_8 {dimension_numbers = #tpu.dot_dimension_numbers<[1], [0], [0], [1], [0, 0, 1, 1], [], []>} : vector<16x200xbf16>, vector<200x40xbf16>, vector<16x40xf32> -> vector<16x40xf32>
    %c0_9 = arith.constant 0 : index
    %c0_10 = arith.constant 0 : index
    %11 = vector.load %arg6[%c0_9, %c0_10] : memref<1x40xf32, #tpu.memory_space<vmem>>, vector<1x40xf32>
    %12 = vector.broadcast %11 : vector<1x40xf32> to vector<16x40xf32>
    %13 = arith.addf %10, %12 : vector<16x40xf32>
    %14 = vector.extract_strided_slice %13 {offsets = [0, 0], sizes = [16, 20], strides = [1, 1]} : vector<16x40xf32> to vector<16x20xf32>
    %15 = vector.extract_strided_slice %13 {offsets = [0, 20], sizes = [16, 20], strides = [1, 1]} : vector<16x40xf32> to vector<16x20xf32>
    %c0_11 = arith.constant 0 : index
    %c0_12 = arith.constant 0 : index
    %16 = vector.load %arg2[%c0_11, %c0_12] : memref<16x20xf32, #tpu.memory_space<vmem>>, vector<16x20xf32>
    %17 = arith.mulf %15, %16 : vector<16x20xf32>
    %18 = arith.addf %14, %17 : vector<16x20xf32>
    %19 = arith.truncf %18 : vector<16x20xf32> to vector<16x20xbf16>
    %c0_13 = arith.constant 0 : index
    %c0_14 = arith.constant 0 : index
    %20 = vector.load %arg7[%c0_13, %c0_14] : memref<20x200xbf16, #tpu.memory_space<vmem>>, vector<20x200xbf16>
    %cst_15 = arith.constant dense<0.000000e+00> : vector<16x200xf32>
    %21 = tpu.matmul %19, %20, %cst_15 {dimension_numbers = #tpu.dot_dimension_numbers<[1], [0], [0], [1], [0, 0, 1, 1], [], []>} : vector<16x20xbf16>, vector<20x200xbf16>, vector<16x200xf32> -> vector<16x200xf32>
    %c0_16 = arith.constant 0 : index
    %c0_17 = arith.constant 0 : index
    %22 = vector.load %arg8[%c0_16, %c0_17] : memref<1x200xf32, #tpu.memory_space<vmem>>, vector<1x200xf32>
    %23 = vector.broadcast %22 : vector<1x200xf32> to vector<16x200xf32>
    %24 = arith.addf %21, %23 : vector<16x200xf32>
    %cst_18 = arith.constant 0.000000e+00 : f32
    %25 = vector.broadcast %cst_18 : f32 to vector<16x200xf32>
    %26 = arith.maximumf %24, %25 : vector<16x200xf32>
    %27 = arith.truncf %26 : vector<16x200xf32> to vector<16x200xbf16>
    %c0_19 = arith.constant 0 : index
    %c0_20 = arith.constant 0 : index
    %28 = vector.load %arg9[%c0_19, %c0_20] : memref<200x784xbf16, #tpu.memory_space<vmem>>, vector<200x784xbf16>
    %cst_21 = arith.constant dense<0.000000e+00> : vector<16x784xf32>
    %29 = tpu.matmul %27, %28, %cst_21 {dimension_numbers = #tpu.dot_dimension_numbers<[1], [0], [0], [1], [0, 0, 1, 1], [], []>} : vector<16x200xbf16>, vector<200x784xbf16>, vector<16x784xf32> -> vector<16x784xf32>
    %c0_22 = arith.constant 0 : index
    %c0_23 = arith.constant 0 : index
    %30 = vector.load %arg10[%c0_22, %c0_23] : memref<1x784xf32, #tpu.memory_space<vmem>>, vector<1x784xf32>
    %31 = vector.broadcast %30 : vector<1x784xf32> to vector<16x784xf32>
    %32 = arith.addf %29, %31 : vector<16x784xf32>
    %33 = arith.truncf %32 : vector<16x784xf32> to vector<16x784xbf16>
    %34 = arith.negf %33 : vector<16x784xbf16>
    %35 = math.exp %34 : vector<16x784xbf16>
    %cst_24 = arith.constant 1.000000e+00 : bf16
    %36 = vector.broadcast %cst_24 : bf16 to vector<16x784xbf16>
    %37 = arith.addf %36, %35 : vector<16x784xbf16>
    %38 = arith.divf %36, %37 : vector<16x784xbf16>
    %c0_25 = arith.constant 0 : index
    %c0_26 = arith.constant 0 : index
    %39 = vector.load %arg11[%c0_25, %c0_26] : memref<16x784xbf16, #tpu.memory_space<vmem>>, vector<16x784xbf16>
    tpu.vector_store %arg11[%c0_25, %c0_26], %38 {strides = array<i32>} : memref<16x784xbf16, #tpu.memory_space<vmem>>, vector<16x784xbf16>,
    %c0_27 = arith.constant 0 : index
    %c0_28 = arith.constant 0 : index
    %40 = vector.load %arg12[%c0_27, %c0_28] : memref<16x40xf32, #tpu.memory_space<vmem>>, vector<16x40xf32>
    tpu.vector_store %arg12[%c0_27, %c0_28], %13 {strides = array<i32>} : memref<16x40xf32, #tpu.memory_space<vmem>>, vector<16x40xf32>,
    return
  }
  func.func @transform_0(%arg0: i32) -> (i32, i32) {
    %c0_i32 = arith.constant 0 : i32
    %c0_i32_0 = arith.constant 0 : i32
    return %arg0, %c0_i32 : i32, i32
  }
  func.func @transform_1(%arg0: i32) -> (i32, i32) {
    %c0_i32 = arith.constant 0 : i32
    %c0_i32_0 = arith.constant 0 : i32
    return %arg0, %c0_i32 : i32, i32
  }
  func.func @transform_2(%arg0: i32) -> (i32, i32) {
    %c0_i32 = arith.constant 0 : i32
    %c0_i32_0 = arith.constant 0 : i32
    %c0_i32_1 = arith.constant 0 : i32
    return %c0_i32, %c0_i32_0 : i32, i32
  }
  func.func @transform_3(%arg0: i32) -> (i32, i32) {
    %c0_i32 = arith.constant 0 : i32
    %c0_i32_0 = arith.constant 0 : i32
    %c0_i32_1 = arith.constant 0 : i32
    return %c0_i32, %c0_i32_0 : i32, i32
  }
  func.func @transform_4(%arg0: i32) -> (i32, i32) {
    %c0_i32 = arith.constant 0 : i32
    %c0_i32_0 = arith.constant 0 : i32
    %c0_i32_1 = arith.constant 0 : i32
    return %c0_i32, %c0_i32_0 : i32, i32
  }
  func.func @transform_5(%arg0: i32) -> (i32, i32) {
    %c0_i32 = arith.constant 0 : i32
    %c0_i32_0 = arith.constant 0 : i32
    %c0_i32_1 = arith.constant 0 : i32
    return %c0_i32, %c0_i32_0 : i32, i32
  }
  func.func @transform_6(%arg0: i32) -> (i32, i32) {
    %c0_i32 = arith.constant 0 : i32
    %c0_i32_0 = arith.constant 0 : i32
    %c0_i32_1 = arith.constant 0 : i32
    return %c0_i32, %c0_i32_0 : i32, i32
  }
  func.func @transform_7(%arg0: i32) -> (i32, i32) {
    %c0_i32 = arith.constant 0 : i32
    %c0_i32_0 = arith.constant 0 : i32
    %c0_i32_1 = arith.constant 0 : i32
    return %c0_i32, %c0_i32_0 : i32, i32
  }
  func.func @transform_8(%arg0: i32) -> (i32, i32) {
    %c0_i32 = arith.constant 0 : i32
    %c0_i32_0 = arith.constant 0 : i32
    %c0_i32_1 = arith.constant 0 : i32
    return %c0_i32, %c0_i32_0 : i32, i32
  }
  func.func @transform_9(%arg0: i32) -> (i32, i32) {
    %c0_i32 = arith.constant 0 : i32
    %c0_i32_0 = arith.constant 0 : i32
    %c0_i32_1 = arith.constant 0 : i32
    return %c0_i32, %c0_i32_0 : i32, i32
  }
  func.func @transform_10(%arg0: i32) -> (i32, i32) {
    %c0_i32 = arith.constant 0 : i32
    %c0_i32_0 = arith.constant 0 : i32
    return %arg0, %c0_i32 : i32, i32
  }
  func.func @transform_11(%arg0: i32) -> (i32, i32) {
    %c0_i32 = arith.constant 0 : i32
    %c0_i32_0 = arith.constant 0 : i32
    return %arg0, %c0_i32 : i32, i32
  }
}

</mosaic_0001>

<bundles_post_ra>
// kernel: tpu_custom_call.1
= control target key start
LH: loop header
LB: loop body
LE: loop exit
PB: predicated region body
PF: predicated region fallthrough
CT: control target
= control target key end

     0   :  { %17 = vsyncpa [#allocation3], 0  ;;  %vm684_vm0 = vcmask 130048   ;;  %s3473_s0 = inlined_call_operand.vmem [shape: bf16[16,784], index: 0, kind: input, shape index: {}]   ;;  %s3474_s1 = inlined_call_operand.vmem [shape: f32[16,20], index: 1, kind: input, shape index: {}]   ;;  %s3475_s2 = inlined_call_operand.vmem [shape: bf16[784,200], index: 2, kind: input, shape index: {}]   ;;  %s3476_s3 = inlined_call_operand.vmem [shape: f32[1,200], index: 3, kind: input, shape index: {}]   ;;  %s3477_s4 = inlined_call_operand.vmem [shape: bf16[200,40], index: 4, kind: input, shape index: {}]   ;;  %s3478_s5 = inlined_call_operand.vmem [shape: f32[1,40], index: 5, kind: input, shape index: {}]   ;;  %s3479_s6 = inlined_call_operand.vmem [shape: bf16[20,200], index: 6, kind: input, shape index: {}]   ;;  %s3480_s7 = inlined_call_operand.vmem [shape: f32[1,200], index: 7, kind: input, shape index: {}]   ;;  %s3481_s8 = inlined_call_operand.vmem [shape: bf16[200,784], index: 8, kind: input, shape index: {}]   ;;  %s3482_s9 = inlined_call_operand.vmem [shape: f32[1,784], index: 9, kind: input, shape index: {}]   ;;  %s3483_s10 = inlined_call_operand.hbm [shape: bf16[16,784], index: 10, kind: output, shape index: {0}]   ;;  %s3484_s11 = inlined_call_operand.hbm [shape: f32[16,40], index: 11, kind: output, shape index: {1}]  }
   0x1   :  { %v2302_v0 = vld [vmem:[%s3475_s2 + $0x74] ss:$8 sps:$4 sm:$0xff]   ;;  %v2304_v1 = vld [vmem:[%s3475_s2 + $0x70] ss:$8 sps:$4 sm:$0xff]   ;;  %v2308_v4 = vld [vmem:[%s3475_s2 + $0x64] ss:$8 sps:$4 sm:$0xff]  }
   0x2   :  { %688 = vmatprep.subr.bf16.mxu0 %v2302_v0  ;;  %v2305_v2 = vld [vmem:[%s3475_s2 + $0x174] ss:$8 sps:$4 sm:$0xff]   ;;  %v2307_v3 = vld [vmem:[%s3475_s2 + $0x170] ss:$8 sps:$4 sm:$0xff]   ;;  %v2310_v5 = vld [vmem:[%s3475_s2 + $0x60] ss:$8 sps:$4 sm:$0xff]  }
   0x3   :  { %689 = vmatpush1.bf16.msra.mxu0 %v2304_v1  ;;  %731 = vmatprep.subr.bf16.mxu1 %v2305_v2  ;;  %v2311_v6 = vld [vmem:[%s3475_s2 + $0x164] ss:$8 sps:$4 sm:$0xff]   ;;  %v2313_v7 = vld [vmem:[%s3475_s2 + $0x160] ss:$8 sps:$4 sm:$0xff]   ;;  %v2314_v8 = vld [vmem:[%s3475_s2 + $0x54] ss:$8 sps:$4 sm:$0xff]  }
   0x4   :  { %732 = vmatpush1.bf16.msra.mxu1 %v2307_v3  ;;  %690 = vmatprep.subr.bf16.mxu0 %v2308_v4  ;;  %v2316_v9 = vld [vmem:[%s3475_s2 + $0x50] ss:$8 sps:$4 sm:$0xff]   ;;  %v2317_v10 = vld [vmem:[%s3475_s2 + $0x154] ss:$8 sps:$4 sm:$0xff]   ;;  %v2320_v11 = vld [vmem:[%s3475_s2 + $0x44] ss:$8 sps:$4 sm:$0xff]  }
   0x5   :  { %733 = vmatprep.subr.bf16.mxu1 %v2311_v6  ;;  %v2319_v12 = vld [vmem:[%s3475_s2 + $0x150] ss:$8 sps:$4 sm:$0xff]   ;;  %v2323_v13 = vld [vmem:[%s3475_s2 + $0x144] ss:$8 sps:$4 sm:$0xff]   ;;  %v2322_v14 = vld [vmem:[%s3475_s2 + $0x40] ss:$8 sps:$4 sm:$0xff]  }
   0x6   :  { %v2326_v15 = vld [vmem:[%s3475_s2 + $0x34] ss:$8 sps:$4 sm:$0xff]   ;;  %v2325_v16 = vld [vmem:[%s3475_s2 + $0x140] ss:$8 sps:$4 sm:$0xff]   ;;  %v2328_v18 = vld [vmem:[%s3475_s2 + $0x30] ss:$8 sps:$4 sm:$0xff]  }
   0x7   :  { %691 = vmatpush1.bf16.msra.mxu0 %v2310_v5  ;;  %v2329_v17 = vld [vmem:[%s3475_s2 + $0x134] ss:$8 sps:$4 sm:$0xff]   ;;  %v2332_v19 = vld [vmem:[%s3475_s2 + $0x24] ss:$8 sps:$4 sm:$0xff]   ;;  %v2331_v20 = vld [vmem:[%s3475_s2 + $0x130] ss:$8 sps:$4 sm:$0xff]  }
   0x8   :  { %692 = vmatprep.subr.bf16.mxu0 %v2314_v8  ;;  %734 = vmatpush1.bf16.msra.mxu1 %v2313_v7  ;;  %v2335_v21 = vld [vmem:[%s3475_s2 + $0x124] ss:$8 sps:$4 sm:$0xff]   ;;  %v2334_v22 = vld [vmem:[%s3475_s2 + $0x20] ss:$8 sps:$4 sm:$0xff]   ;;  %v2338_v23 = vld [vmem:[%s3475_s2 + $0x14] ss:$8 sps:$4 sm:$0xff]  }
   0x9   :  { %735 = vmatprep.subr.bf16.mxu1 %v2317_v10  ;;  %v2337_v24 = vld [vmem:[%s3475_s2 + $0x120] ss:$8 sps:$4 sm:$0xff]   ;;  %v2341_v25 = vld [vmem:[%s3475_s2 + $0x114] ss:$8 sps:$4 sm:$0xff]   ;;  %v2340_v26 = vld [vmem:[%s3475_s2 + $0x10] ss:$8 sps:$4 sm:$0xff]  }
   0xa   :  { %v2344_v27 = vld [vmem:[%s3475_s2 + $0x4] ss:$8 sps:$4 sm:$0xff]   ;;  %v2343_v28 = vld [vmem:[%s3475_s2 + $0x110] ss:$8 sps:$4 sm:$0xff]   ;;  %v2346_v30 = vld [vmem:[%s3475_s2] ss:$8 sps:$4 sm:$0xff]  }
   0xb   :  { %693 = vmatpush1.bf16.msra.mxu0 %v2316_v9  ;;  %v2347_v29 = vld [vmem:[%s3475_s2 + $0x104] ss:$8 sps:$4 sm:$0xff]   ;;  %v2350_v31 = vld [vmem:[%s3475_s2 + $0xf4] ss:$8 sps:$4 sm:$0xff]   ;;  %v2349_v32 = vld [vmem:[%s3475_s2 + $0x100] ss:$8 sps:$4 sm:$0xff]  }
   0xc   :  { %694 = vmatprep.subr.bf16.mxu0 %v2320_v11  ;;  %736 = vmatpush1.bf16.msra.mxu1 %v2319_v12  ;;  %v2353_v33 = vld [vmem:[%s3475_s2 + $0x1f4] ss:$8 sps:$4 sm:$0xff]   ;;  %v2352_v34 = vld [vmem:[%s3475_s2 + $0xf0] ss:$8 sps:$4 sm:$0xff]   ;;  %v2356_v35 = vld [vmem:[%s3475_s2 + $0xe4] ss:$8 sps:$4 sm:$0xff]  }
   0xd   :  { %737 = vmatprep.subr.bf16.mxu1 %v2323_v13  ;;  %v2355_v36 = vld [vmem:[%s3475_s2 + $0x1f0] ss:$8 sps:$4 sm:$0xff]   ;;  %v2359_v37 = vld [vmem:[%s3475_s2 + $0x1e4] ss:$8 sps:$4 sm:$0xff]   ;;  %v2358_v38 = vld [vmem:[%s3475_s2 + $0xe0] ss:$8 sps:$4 sm:$0xff]  }
   0xe   :  { %v2362_v39 = vld [vmem:[%s3475_s2 + $0xd4] ss:$8 sps:$4 sm:$0xff]   ;;  %v2361_v40 = vld [vmem:[%s3475_s2 + $0x1e0] ss:$8 sps:$4 sm:$0xff]   ;;  %v2364_v42 = vld [vmem:[%s3475_s2 + $0xd0] ss:$8 sps:$4 sm:$0xff]  }
   0xf   :  { %695 = vmatpush1.bf16.msra.mxu0 %v2322_v14  ;;  %v2365_v41 = vld [vmem:[%s3475_s2 + $0x1d4] ss:$8 sps:$4 sm:$0xff]   ;;  %v2368_v43 = vld [vmem:[%s3475_s2 + $0xc4] ss:$8 sps:$4 sm:$0xff]   ;;  %v2367_v44 = vld [vmem:[%s3475_s2 + $0x1d0] ss:$8 sps:$4 sm:$0xff]  }
  0x10   :  { %696 = vmatprep.subr.bf16.mxu0 %v2326_v15  ;;  %738 = vmatpush1.bf16.msra.mxu1 %v2325_v16  ;;  %v2371_v45 = vld [vmem:[%s3475_s2 + $0x1c4] ss:$8 sps:$4 sm:$0xff]   ;;  %v2370_v46 = vld [vmem:[%s3475_s2 + $0xc0] ss:$8 sps:$4 sm:$0xff]   ;;  %v2374_v48 = vld [vmem:[%s3475_s2 + $0xb4] ss:$8 sps:$4 sm:$0xff]  }
  0x11   :  { %739 = vmatprep.subr.bf16.mxu1 %v2329_v17  ;;  %v2399_v47 = vld [vmem:[%s3473_s0 + $0x4] ss:$28 sps:$4 sm:$0xff]   ;;  %v2377_v50 = vld [vmem:[%s3475_s2 + $0x1b4] ss:$8 sps:$4 sm:$0xff]   ;;  %v2406_v51 = vld [vmem:[%s3473_s0 + $0xc] ss:$28 sps:$4 sm:$0xff]  }
  0x12   :  { %v2373_v49 = vld [vmem:[%s3475_s2 + $0x1c0] ss:$8 sps:$4 sm:$0xff]   ;;  %720 = vmatprep.mubr.bf16.mxu0 %v2399_v47  ;;  %v2376_v52 = vld [vmem:[%s3475_s2 + $0xb0] ss:$8 sps:$4 sm:$0xff]   ;;  %v2380_v53 = vld [vmem:[%s3475_s2 + $0xa4] ss:$8 sps:$4 sm:$0xff]   ;;  %763 = vmatprep.mubr.bf16.mxu1 %v2406_v51 }
  0x13   :  { %697 = vmatpush1.bf16.msra.mxu0 %v2328_v18  ;;  %v2379_v54 = vld [vmem:[%s3475_s2 + $0x1b0] ss:$8 sps:$4 sm:$0xff]   ;;  %v2383_v55 = vld [vmem:[%s3475_s2 + $0x1a4] ss:$8 sps:$4 sm:$0xff]   ;;  %v2382_v56 = vld [vmem:[%s3475_s2 + $0xa0] ss:$8 sps:$4 sm:$0xff]  }
  0x14   :  { %698 = vmatprep.subr.bf16.mxu0 %v2332_v19  ;;  %740 = vmatpush1.bf16.msra.mxu1 %v2331_v20  ;;  %v2386_v57 = vld [vmem:[%s3475_s2 + $0x94] ss:$8 sps:$4 sm:$0xff]   ;;  %v2385_v58 = vld [vmem:[%s3475_s2 + $0x1a0] ss:$8 sps:$4 sm:$0xff]   ;;  %v2388_v60 = vld [vmem:[%s3475_s2 + $0x90] ss:$8 sps:$4 sm:$0xff]  }
  0x15   :  { %741 = vmatprep.subr.bf16.mxu1 %v2335_v21  ;;  %v2389_v59 = vld [vmem:[%s3475_s2 + $0x194] ss:$8 sps:$4 sm:$0xff]   ;;  %v2392_v61 = vld [vmem:[%s3475_s2 + $0x84] ss:$8 sps:$4 sm:$0xff]   ;;  %v2391_v62 = vld [vmem:[%s3475_s2 + $0x190] ss:$8 sps:$4 sm:$0xff]  }
  0x16   :  { %v2395_v63 = vld [vmem:[%s3475_s2 + $0x184] ss:$8 sps:$4 sm:$0xff]   ;;  %v2394_v0 = vld [vmem:[%s3475_s2 + $0x80] ss:$8 sps:$4 sm:$0xff]   ;;  %v2403_v1 = vld [vmem:[%s3475_s2 + $0x274] ss:$8 sps:$4 sm:$0xff]  }
  0x17   :  { %699 = vmatpush1.bf16.msra.mxu0 %v2334_v22  ;;  %v2400_v2 = vld [vmem:[%s3475_s2 + $0x180] ss:$8 sps:$4 sm:$0xff]   ;;  %v2401_v4 = vld [vmem:[%s3475_s2 + $0x270] ss:$8 sps:$4 sm:$0xff]   ;;  %v2409_v6 = vld [vmem:[%s3475_s2 + $0x264] ss:$8 sps:$4 sm:$0xff]  }
  0x18   :  { %700 = vmatprep.subr.bf16.mxu0 %v2338_v23  ;;  %742 = vmatpush1.bf16.msra.mxu1 %v2337_v24  ;;  %v2397_v3 = vld [vmem:[%s3473_s0] ss:$28 sps:$4 sm:$0xff]   ;;  %v2404_v5 = vld [vmem:[%s3473_s0 + $0x8] ss:$28 sps:$4 sm:$0xff]   ;;  %v2410_v11 = vld [vmem:[%s3475_s2 + $0x250] ss:$8 sps:$4 sm:$0xff]  }
  0x19   :  { %743 = vmatprep.subr.bf16.mxu1 %v2341_v25  ;;  %v2449_v7 = vld [vmem:[%s3475_s2 + $0x300] ss:$8 sps:$4 sm:$0xff]   ;;  %v2451_v8 = vld [vmem:[%s3475_s2 + $0x304] ss:$8 sps:$4 sm:$0xff]   ;;  %v2412_v10 = vld [vmem:[%s3475_s2 + $0x254] ss:$8 sps:$4 sm:$0xff]  }
  0x1a   :  { %v2407_v9 = vld [vmem:[%s3475_s2 + $0x260] ss:$8 sps:$4 sm:$0xff]   ;;  %v2676_v12 = vmov 0   ;;  %v2415_v13 = vld [vmem:[%s3475_s2 + $0x244] ss:$8 sps:$4 sm:$0xff]  }
  0x1b   :  { %701 = vmatpush1.bf16.msra.mxu0 %v2340_v26  ;;  %v2455_v14 = vld [vmem:[%s3473_s0 + $0x18] ss:$28 sps:$4 sm:$0xff]   ;;  %v2413_v16 = vld [vmem:[%s3475_s2 + $0x240] ss:$8 sps:$4 sm:$0xff]   ;;  %v2421_v19 = vld [vmem:[%s3475_s2 + $0x224] ss:$8 sps:$4 sm:$0xff]  }
  0x1c   :  { %702 = vmatprep.subr.bf16.mxu0 %v2344_v27  ;;  %744 = vmatpush1.bf16.msra.mxu1 %v2343_v28  ;;  %v2458_v15 = vld [vmem:[%s3473_s0 + $0x14] ss:$28 sps:$4 sm:$0xff]   ;;  %v2419_v20 = vld [vmem:[%s3475_s2 + $0x220] ss:$8 sps:$4 sm:$0xff]   ;;  %v2427_v23 = vld [vmem:[%s3475_s2 + $0x204] ss:$8 sps:$4 sm:$0xff]  }
  0x1d   :  { %745 = vmatprep.subr.bf16.mxu1 %v2347_v29  ;;  %v2418_v17 = vld [vmem:[%s3475_s2 + $0x234] ss:$8 sps:$4 sm:$0xff]   ;;  %v2416_v18 = vld [vmem:[%s3475_s2 + $0x230] ss:$8 sps:$4 sm:$0xff]   ;;  %v2425_v24 = vld [vmem:[%s3475_s2 + $0x200] ss:$8 sps:$4 sm:$0xff]  }
  0x1e   :  { %v2424_v21 = vld [vmem:[%s3475_s2 + $0x214] ss:$8 sps:$4 sm:$0xff]   ;;  %v2422_v22 = vld [vmem:[%s3475_s2 + $0x210] ss:$8 sps:$4 sm:$0xff]   ;;  %v2433_v27 = vld [vmem:[%s3475_s2 + $0x2e4] ss:$8 sps:$4 sm:$0xff]  }
  0x1f   :  { %703 = vmatpush1.bf16.msra.mxu0 %v2346_v30  ;;  %v2430_v25 = vld [vmem:[%s3475_s2 + $0x2f4] ss:$8 sps:$4 sm:$0xff]   ;;  %v2428_v26 = vld [vmem:[%s3475_s2 + $0x2f0] ss:$8 sps:$4 sm:$0xff]   ;;  %v2431_v28 = vld [vmem:[%s3475_s2 + $0x2e0] ss:$8 sps:$4 sm:$0xff]  }
  0x20   :  { %704 = vmatprep.subr.bf16.mxu0 %v2350_v31  ;;  %746 = vmatpush1.bf16.msra.mxu1 %v2349_v32  ;;  %v2436_v29 = vld [vmem:[%s3475_s2 + $0x2d4] ss:$8 sps:$4 sm:$0xff]   ;;  %v2434_v30 = vld [vmem:[%s3475_s2 + $0x2d0] ss:$8 sps:$4 sm:$0xff]   ;;  %v2439_v31 = vld [vmem:[%s3475_s2 + $0x2c4] ss:$8 sps:$4 sm:$0xff]  }
  0x21   :  { %747 = vmatprep.subr.bf16.mxu1 %v2353_v33  ;;  %v2437_v32 = vld [vmem:[%s3475_s2 + $0x2c0] ss:$8 sps:$4 sm:$0xff]   ;;  %v2442_v33 = vld [vmem:[%s3475_s2 + $0x2b4] ss:$8 sps:$4 sm:$0xff]  }
  0x23   :  { %705 = vmatpush2.bf16.msra.mxu0 %v2352_v34  ;;  %v2440_v34 = vld [vmem:[%s3475_s2 + $0x2b0] ss:$8 sps:$4 sm:$0xff]  }
  0x24   :  { %706 = vmatprep.subr.bf16.mxu0 %v2356_v35  ;;  %748 = vmatpush2.bf16.msra.mxu1 %v2355_v36  ;;  %v2445_v35 = vld [vmem:[%s3475_s2 + $0x2a4] ss:$8 sps:$4 sm:$0xff]  }
  0x25   :  { %749 = vmatprep.subr.bf16.mxu1 %v2359_v37 }
  0x27   :  { %707 = vmatpush2.bf16.msra.mxu0 %v2358_v38 }
  0x28   :  { %708 = vmatprep.subr.bf16.mxu0 %v2362_v39  ;;  %750 = vmatpush2.bf16.msra.mxu1 %v2361_v40 }
  0x29   :  { %751 = vmatprep.subr.bf16.mxu1 %v2365_v41 }
  0x2b   :  { %709 = vmatpush2.bf16.msra.mxu0 %v2364_v42 }
  0x2c   :  { %710 = vmatprep.subr.bf16.mxu0 %v2368_v43  ;;  %752 = vmatpush2.bf16.msra.mxu1 %v2367_v44 }
  0x2d   :  { %753 = vmatprep.subr.bf16.mxu1 %v2371_v45 }
  0x2f   :  { %711 = vmatpush2.bf16.msra.mxu0 %v2370_v46 }
  0x30   :  { %712 = vmatprep.subr.bf16.mxu0 %v2374_v48  ;;  %754 = vmatpush2.bf16.msra.mxu1 %v2373_v49 }
  0x31   :  { %755 = vmatprep.subr.bf16.mxu1 %v2377_v50 }
  0x33   :  { %713 = vmatpush2.bf16.msra.mxu0 %v2376_v52 }
  0x34   :  { %714 = vmatprep.subr.bf16.mxu0 %v2380_v53  ;;  %756 = vmatpush2.bf16.msra.mxu1 %v2379_v54 }
  0x35   :  { %757 = vmatprep.subr.bf16.mxu1 %v2383_v55 }
  0x37   :  { %715 = vmatpush2.bf16.msra.mxu0 %v2382_v56 }
  0x38   :  { %716 = vmatprep.subr.bf16.mxu0 %v2386_v57  ;;  %758 = vmatpush2.bf16.msra.mxu1 %v2385_v58 }
  0x39   :  { %759 = vmatprep.subr.bf16.mxu1 %v2389_v59 }
  0x3b   :  { %717 = vmatpush2.bf16.msra.mxu0 %v2388_v60 }
  0x3c   :  { %718 = vmatprep.subr.bf16.mxu0 %v2392_v61  ;;  %760 = vmatpush2.bf16.msra.mxu1 %v2391_v62 }
  0x3d   :  { %761 = vmatprep.subr.bf16.mxu1 %v2395_v63 }
  0x3f   :  { %719 = vmatpush2.bf16.msra.mxu0 %v2394_v0 }
  0x40   :  { %774 = vmatprep.subr.bf16.mxu0 %v2403_v1  ;;  %762 = vmatpush2.bf16.msra.mxu1 %v2400_v2 }
  0x41   :  { %831 = vmatprep.subr.bf16.mxu1 %v2451_v8 }
  0x42   :  { %721 = vmatmul.mubr.bf16.vlgmr.msra.gmra.mxu0 %v2397_v3 }
  0x43   :  { %775 = vmatpush1.bf16.msra.mxu0 %v2401_v4  ;;  %764 = vmatmul.mubr.bf16.vlgmr.msra.gmra.mxu1 %v2404_v5 }
  0x44   :  { %776 = vmatprep.subr.bf16.mxu0 %v2409_v6  ;;  %849 = vmatprep.mubr.bf16.mxu1 %v2676_v12 }
  0x45   :  { %832 = vmatpush1.bf16.msra.mxu1 %v2449_v7  ;;  %806 = vmatprep.mubr.bf16.mxu0 %v2458_v15 }
  0x46   :  { %981 = vmatprep.subr.bf16.mxu1 %v2676_v12 }
  0x47   :  { %777 = vmatpush1.bf16.msra.mxu0 %v2407_v9 }
  0x48   :  { %778 = vmatprep.subr.bf16.mxu0 %v2412_v10 }
  0x4b   :  { %779 = vmatpush1.bf16.msra.mxu0 %v2410_v11  ;;  %2158 = vmatmul.mubr.msk.bf16.vlgmr.msra.gmra.mxu1 %vm684_vm0, %v2455_v14 }
  0x4c   :  { %780 = vmatprep.subr.bf16.mxu0 %v2415_v13 }
  0x4f   :  { %781 = vmatpush1.bf16.msra.mxu0 %v2413_v16 }
  0x50   :  { %782 = vmatprep.subr.bf16.mxu0 %v2418_v17 }
  0x53   :  { %783 = vmatpush1.bf16.msra.mxu0 %v2416_v18 }
  0x54   :  { %784 = vmatprep.subr.bf16.mxu0 %v2421_v19 }
  0x57   :  { %785 = vmatpush1.bf16.msra.mxu0 %v2419_v20 }
  0x58   :  { %786 = vmatprep.subr.bf16.mxu0 %v2424_v21 }
  0x5b   :  { %787 = vmatpush1.bf16.msra.mxu0 %v2422_v22 }
  0x5c   :  { %788 = vmatprep.subr.bf16.mxu0 %v2427_v23 }
  0x5f   :  { %789 = vmatpush1.bf16.msra.mxu0 %v2425_v24 }
  0x60   :  { %790 = vmatprep.subr.bf16.mxu0 %v2430_v25 }
  0x63   :  { %791 = vmatpush2.bf16.msra.mxu0 %v2428_v26 }
  0x64   :  { %792 = vmatprep.subr.bf16.mxu0 %v2433_v27 }
  0x67   :  { %793 = vmatpush2.bf16.msra.mxu0 %v2431_v28 }
  0x68   :  { %794 = vmatprep.subr.bf16.mxu0 %v2436_v29 }
  0x6b   :  { %795 = vmatpush2.bf16.msra.mxu0 %v2434_v30 }
  0x6c   :  { %796 = vmatprep.subr.bf16.mxu0 %v2439_v31 }
  0x6f   :  { %797 = vmatpush2.bf16.msra.mxu0 %v2437_v32 }
  0x70   :  { %798 = vmatprep.subr.bf16.mxu0 %v2442_v33 }
  0x71   :  { %18 = vsyncpa [#allocation5], 0  ;;  %v2443_v36 = vld [vmem:[%s3475_s2 + $0x2a0] ss:$8 sps:$4 sm:$0xff]   ;;  %v2448_v37 = vld [vmem:[%s3475_s2 + $0x294] ss:$8 sps:$4 sm:$0xff]   ;;  %v149_v58 = vlaneseq }
  0x72   :  { %v2446_v38 = vld [vmem:[%s3475_s2 + $0x290] ss:$8 sps:$4 sm:$0xff]   ;;  %v2454_v39 = vld [vmem:[%s3475_s2 + $0x284] ss:$8 sps:$4 sm:$0xff]   ;;  %v2452_v40 = vld [vmem:[%s3475_s2 + $0x280] ss:$8 sps:$4 sm:$0xff]  }
  0x73   :  { %799 = vmatpush2.bf16.msra.mxu0 %v2440_v34  ;;  %v2456_v41 = vld [vmem:[%s3473_s0 + $0x10] ss:$28 sps:$4 sm:$0xff]   ;;  %v2459_v42 = vld [vmem:[%s3477_s4 + $0x38] sm:$0xff]   ;;  %v2462_v45 = vld [vmem:[%s3477_s4 + $0x20] sm:$0xff]   ;;  %vm977_vm1 = vcmask 1043456   ;;  %s2677_s23 = smov 20  }
  0x74   :  { %800 = vmatprep.subr.bf16.mxu0 %v2445_v35  ;;  %982 = vmatpush1.bf16.msra.mxu1 %v2459_v42  ;;  %v2460_v43 = vld [vmem:[%s3477_s4 + $0x30] sm:$0xff]   ;;  %v2461_v44 = vld [vmem:[%s3477_s4 + $0x28] sm:$0xff]   ;;  %v2463_v46 = vld [vmem:[%s3477_s4 + $0x18] sm:$0xff]   ;;  %v3120_v60 = vshrl.u32 %v149_v58, 7  ;;  %vm973_vm2 = vcmask 588800   ;;  %vm1079_vm3 = vcmask 1041408  }
  0x75   :  { %983 = vmatprep.subr.bf16.mxu1 %v2676_v12  ;;  %v2464_v47 = vld [vmem:[%s3477_s4 + $0x10] sm:$0xff]   ;;  %v2465_v48 = vld [vmem:[%s3477_s4 + $0x8] sm:$0xff]   ;;  %v2466_v49 = vld [vmem:[%s3477_s4] sm:$0xff]   ;;  %vm2018_vm4 = vcmask 326656   ;;  %s2678_s2 = smov 108   ;;  %vm1075_vm5 = vcmask 162816  }
  0x76   :  { %v2467_v50 = vld [vmem:[%s3477_s4 + $0x60] ss:$0 sps:$4 sm:$0xff]   ;;  %v2468_v52 = vld [vmem:[%s3477_s4 + $0x58] sm:$0xff]   ;;  %v2469_v53 = vld [vmem:[%s3477_s4 + $0x50] sm:$0xff]   ;;  %v3123_v63 = vsub.s32 1, %v3120_v60  ;;  %v3129_v1 = vsub.s32 0, %v3120_v60 }
  0x77   :  { %801 = vmatpush2.bf16.msra.mxu0 %v2443_v36  ;;  %v979_v51 = vsel %vm977_vm1, %v2467_v50, 0  ;;  %v2470_v54 = vld [vmem:[%s3477_s4 + $0x48] sm:$0xff]   ;;  %v2471_v55 = vld [vmem:[%s3477_s4 + $0x40] sm:$0xff]   ;;  %s2679_s27 = smov [#allocation4]  }
  0x78   :  { %802 = vmatprep.subr.bf16.mxu0 %v2448_v37  ;;  %984 = vmatpush1.bf16.msra.mxu1 %v2460_v43  ;;  %v1022_v56 = vld [vmem:[%s3474_s1] sm:$0xff]  ;;  %v1023_v57 = vld [vmem:[%s3474_s1 + $0x8] sm:$0xff]  ;;  %s2038_s28 = sshll.u32 %s2679_s27, 4  ;;  %s2039_s28 = int_to_ptr.vmem [resolvable:$true] %s2038_s28 }
  0x79   :  { %985 = vmatprep.subr.bf16.mxu1 %v2676_v12  ;;  %1026 = vrot.lane.b32.xlu0 %v1022_v56, %s2677_s23  ;;  %v147_v0 = vld [vmem:[%s3476_s3] sm:$0x3]  ;;  %v2479_v50 = vld [vmem:[%s3481_s8 + $0x18c] ss:$28 sps:$4 sm:$0xff]   ;;  %s2632_s29 = scalar_lea.vmem %s2039_s28, 256  ;;  %p2637_p1 = scmp.lt.s32.totalorder %s2039_s28, %s2039_s28 }
  0x7a   :  { %v156_v4 = vrot.slane %v147_v0, %v3123_v63  ;;  %v152_v5 = vrot.slane %v147_v0, %v3129_v1  ;;  %v2483_v56 = vld [vmem:[%s3481_s8 + $0x150] ss:$28 sps:$4 sm:$0xff]   ;;  %p2633_p0 = scmp.ne.s32.totalorder %s2039_s28, %s2632_s29  ;;  %p2638_p2 = scmp.lt.s32.totalorder %s2632_s29, %s2632_s29 }
  0x7b   :  { %803 = vmatpush2.bf16.msra.mxu0 %v2446_v38 }
  0x7c   :  { %804 = vmatprep.subr.bf16.mxu0 %v2454_v39  ;;  %986 = vmatpush1.bf16.msra.mxu1 %v2461_v44  ;;  %v2476_v44 = vld [vmem:[%s3479_s6 + $0x4] ss:$8 sps:$4 sm:$0xff]   ;;  %p2639_p3 = por %p2638_p2, %p2637_p1 }
  0x7d   :  { %987 = vmatprep.subr.bf16.mxu1 %v2676_v12  ;;  %1028 = vrot.lane.b32.xlu0 %v1023_v57, %s2677_s23 }
  0x7e   :  { %p2640_p4 = pnand %p2639_p3, %p2633_p0 }
  0x7f   :  { %805 = vmatpush2.bf16.msra.mxu0 %v2452_v40  ;;  %v1047_v40 = vld [vmem:[%s3479_s6 + $0x10] sm:$0x33] }
  0x80   :  { %988 = vmatpush1.bf16.msra.mxu1 %v2462_v45  ;;  %v2176_v42 = vcombine.low %v1047_v40, %v1047_v40  ;;  %v2474_v45 = vld [vmem:[%s3479_s6] ss:$8 sps:$4 sm:$0xff]   ;;  %1746 = vmatprep.subr.bf16.mxu0 %v2479_v50  ;;  %v2543_v50 = vld [vmem:[%s3481_s8 + $0x1fc] ss:$28 sps:$4 sm:$0xff]  }
  0x81   :  { %989 = vmatprep.subr.bf16.mxu1 %v2676_v12 }
  0x82   :  { %807 = vmatmul.mubr.bf16.vlgmr.msra.gmra.mxu0 %v2456_v41  ;;  %v2177_v41 = vcombine.high %v1047_v40, %v1047_v40  ;;  %v1081_v43 = vsel %vm1079_vm3, %v2176_v42, 0  ;;  %v2522_v40 = vld [vmem:[%s3481_s8 + $0x8] ss:$28 sps:$4 sm:$0xff]  }
  0x84   :  { %990 = vmatpush1.bf16.msra.mxu1 %v2463_v46  ;;  %v2159_v46 = vld [vmem:[%s3478_s5] ss:$0 sm:$0xff] }
  0x85   :  { %991 = vmatprep.subr.bf16.mxu1 %v2676_v12 }
  0x88   :  { %992 = vmatpush1.bf16.msra.mxu1 %v2464_v47 }
  0x89   :  { %993 = vmatprep.subr.bf16.mxu1 %v2676_v12 }
  0x8c   :  { %994 = vmatpush1.bf16.msra.mxu1 %v2465_v48 }
  0x8d   :  { %995 = vmatprep.subr.bf16.mxu1 %v2676_v12 }
  0x90   :  { %996 = vmatpush1.bf16.msra.mxu1 %v2466_v49  ;;  %v2477_v49 = vld [vmem:[%s3481_s8 + $0x188] ss:$28 sps:$4 sm:$0xff]  }
  0x91   :  { %1003 = vmatprep.subr.bf16.mxu1 %v2676_v12  ;;  %1747 = vmatpush1.bf16.msra.mxu0 %v2477_v49  ;;  %v2538_v49 = vld [vmem:[%s3481_s8 + $0x238] ss:$28 sps:$4 sm:$0xff]  }
  0x94   :  { %1004 = vmatpush2.bf16.msra.mxu1 %v979_v51 }
  0x95   :  { %1005 = vmatprep.subr.bf16.mxu1 %v2676_v12 }
  0x98   :  { %1006 = vmatpush2.bf16.msra.mxu1 %v2468_v52  ;;  %v2482_v52 = vld [vmem:[%s3481_s8 + $0x194] ss:$28 sps:$4 sm:$0xff]  }
  0x99   :  { %1007 = vmatprep.subr.bf16.mxu1 %v2676_v12 }
  0x9c   :  { %1008 = vmatpush2.bf16.msra.mxu1 %v2469_v53  ;;  %v2485_v53 = vld [vmem:[%s3481_s8 + $0x154] ss:$28 sps:$4 sm:$0xff]  }
  0x9d   :  { %1009 = vmatprep.subr.bf16.mxu1 %v2676_v12  ;;  %1748 = vmatprep.subr.bf16.mxu0 %v2485_v53  ;;  %v2544_v53 = vld [vmem:[%s3481_s8 + $0x200] ss:$28 sps:$4 sm:$0xff]  }
  0x9e   :  { %1749 = vmatpush1.bf16.msra.mxu0 %v2483_v56  ;;  %v2547_v56 = vld [vmem:[%s3481_s8 + $0x1c0] ss:$28 sps:$4 sm:$0xff]  }
  0xa0   :  { %1010 = vmatpush2.bf16.msra.mxu1 %v2470_v54 }
  0xa1   :  { %1011 = vmatprep.subr.bf16.mxu1 %v2676_v12 }
  0xa4   :  { %1012 = vmatpush2.bf16.msra.mxu1 %v2471_v55 }
  0xa5   :  { %2178 = vmatprep.subr.msk.bf16.mxu1 %vm1079_vm3, %v2177_v41 }
  0xeb   :  { %v1027_v47 = vpop.permute.xlu0 %1026 }
  0xef   :  { %v1029_v58 = vpop.permute.xlu0 %1028 }
 0x102   :  { %v722_v61 = vpop.f32.mrf.mxu0 }
 0x103   :  { %v765_v59 = vpop.f32.mrf.mxu1  ;;  %v723_v10 = vadd.f32 %v722_v61, %v152_v5  ;;  %v2491_v61 = vld [vmem:[%s3481_s8 + $0x11c] ss:$28 sps:$4 sm:$0xff]  }
 0x104   :  { %v724_v2 = vpop.f32.mrf.mxu0  ;;  %1750 = vmatprep.subr.bf16.mxu0 %v2491_v61 }
 0x105   :  { %v767_v62 = vpop.f32.mrf.mxu1  ;;  %v725_v9 = vadd.f32 %v724_v2, %v156_v4  ;;  %v766_v18 = vadd.f32 %v765_v59, %v723_v10  ;;  %v2489_v2 = vld [vmem:[%s3481_s8 + $0x118] ss:$28 sps:$4 sm:$0xff]  }
 0x106   :  { %v726_v6 = vpop.f32.mrf.mxu0  ;;  %1751 = vmatpush1.bf16.msra.mxu0 %v2489_v2  ;;  %v2513_v10 = vld [vmem:[%s3481_s8 + $0x38] ss:$28 sps:$4 sm:$0xff]  }
 0x107   :  { %v769_v3 = vpop.f32.mrf.mxu1  ;;  %v727_v13 = vadd.f32 %v726_v6, %v152_v5  ;;  %v768_v16 = vadd.f32 %v767_v62, %v725_v9  ;;  %v2503_v5 = vld [vmem:[%s3481_s8 + $0xac] ss:$28 sps:$4 sm:$0xff]   ;;  %v2515_v9 = vld [vmem:[%s3481_s8 + $0x3c] ss:$28 sps:$4 sm:$0xff]  }
 0x108   :  { %v728_v11 = vpop.f32.mrf.mxu0  ;;  %v2501_v6 = vld [vmem:[%s3481_s8 + $0xa8] ss:$28 sps:$4 sm:$0xff]  }
 0x109   :  { %v771_v7 = vpop.f32.mrf.mxu1  ;;  %v729_v17 = vadd.f32 %v728_v11, %v156_v4  ;;  %v770_v20 = vadd.f32 %v769_v3, %v727_v13  ;;  %v2497_v3 = vld [vmem:[%s3481_s8 + $0xe4] ss:$28 sps:$4 sm:$0xff]  }
 0x10a   :  { %v2495_v4 = vld [vmem:[%s3481_s8 + $0xe0] ss:$28 sps:$4 sm:$0xff]   ;;  %1752 = vmatprep.subr.bf16.mxu0 %v2497_v3 }
 0x10b   :  { %v851_v8 = vpop.f32.mrf.mxu1  ;;  %v772_v25 = vadd.f32 %v771_v7, %v729_v17  ;;  %1753 = vmatpush1.bf16.msra.mxu0 %v2495_v4  ;;  %v2509_v7 = vld [vmem:[%s3481_s8 + $0x74] ss:$28 sps:$4 sm:$0xff]   ;;  %v2521_v11 = vld [vmem:[%s3481_s8 + $0x4] ss:$28 sps:$4 sm:$0xff]  }
 0x10c   :  { %1754 = vmatprep.subr.bf16.mxu0 %v2503_v5  ;;  %v2519_v13 = vld [vmem:[%s3481_s8] ss:$28 sps:$4 sm:$0xff]  }
 0x10d   :  { %v853_v14 = vpop.f32.mrf.mxu1 }
 0x10f   :  { %v855_v23 = vpop.f32.mrf.mxu1  ;;  %1755 = vmatpush1.bf16.msra.mxu0 %v2501_v6 }
 0x110   :  { %1756 = vmatprep.subr.bf16.mxu0 %v2509_v7 }
 0x111   :  { %v857_v32 = vpop.f32.mrf.mxu1 }
 0x142   :  { %v808_v15 = vpop.f32.mrf.mxu0 }
 0x143   :  { %v809_v22 = vadd.f32 %v808_v15, %v766_v18  ;;  %v2531_v18 = vld [vmem:[%s3481_s8 + $0x26c] ss:$28 sps:$4 sm:$0xff]  }
 0x144   :  { %v810_v19 = vpop.f32.mrf.mxu0 }
 0x145   :  { %v811_v21 = vadd.f32 %v810_v19, %v768_v16  ;;  %v852_v31 = vadd.f32 %v851_v8, %v809_v22  ;;  %v2507_v8 = vld [vmem:[%s3481_s8 + $0x70] ss:$28 sps:$4 sm:$0xff]   ;;  %v2529_v19 = vld [vmem:[%s3481_s8 + $0x268] ss:$28 sps:$4 sm:$0xff]  }
 0x146   :  { %v812_v24 = vpop.f32.mrf.mxu0  ;;  %1757 = vmatpush1.bf16.msra.mxu0 %v2507_v8 }
 0x147   :  { %v813_v26 = vadd.f32 %v812_v24, %v770_v20  ;;  %v854_v28 = vadd.f32 %v853_v14, %v811_v21  ;;  %v860_v37 = vmax.f32 %v852_v31, 0.0  ;;  %1758 = vmatprep.subr.bf16.mxu0 %v2515_v9  ;;  %v1231_v14 = vld [vmem:[%s3481_s8 + $0x2a0] sm:$0xff]  ;;  %v2480_v24 = vld [vmem:[%s3481_s8 + $0x190] ss:$28 sps:$4 sm:$0xff]  }
 0x148   :  { %v814_v27 = vpop.f32.mrf.mxu0  ;;  %v2265_v15 = vcombine.high %v1231_v14, %v1231_v14  ;;  %v2264_v16 = vcombine.low %v1231_v14, %v1231_v14  ;;  %v2498_v31 = vld [vmem:[%s3481_s8 + $0xe8] ss:$28 sps:$4 sm:$0xff]  }
 0x149   :  { %v856_v29 = vadd.f32 %v855_v23, %v813_v26  ;;  %v815_v30 = vadd.f32 %v814_v27, %v772_v25  ;;  %v861_v35 = vmax.f32 %v854_v28, 0.0  ;;  %v2488_v26 = vld [vmem:[%s3481_s8 + $0x15c] ss:$28 sps:$4 sm:$0xff]   ;;  %v2494_v28 = vld [vmem:[%s3481_s8 + $0x124] ss:$28 sps:$4 sm:$0xff]  }
 0x14a   :  { %1759 = vmatpush1.bf16.msra.mxu0 %v2513_v10  ;;  %v1726_v17 = vsel %vm977_vm1, %v2264_v16, 0  ;;  %v2486_v27 = vld [vmem:[%s3481_s8 + $0x158] ss:$28 sps:$4 sm:$0xff]   ;;  %v2556_v16 = vld [vmem:[%s3481_s8 + $0x1a0] ss:$28 sps:$4 sm:$0xff]  }
 0x14b   :  { %v858_v33 = vadd.f32 %v857_v32, %v815_v30  ;;  %v862_v34 = vmax.f32 %v856_v29, 0.0  ;;  %1760 = vmatprep.subr.bf16.mxu0 %v2521_v11  ;;  %v2492_v29 = vld [vmem:[%s3481_s8 + $0x120] ss:$28 sps:$4 sm:$0xff]   ;;  %v2500_v30 = vld [vmem:[%s3481_s8 + $0xec] ss:$28 sps:$4 sm:$0xff]  }
 0x14c   :  { %v2506_v32 = vld [vmem:[%s3481_s8 + $0xb4] ss:$28 sps:$4 sm:$0xff]  }
 0x14d   :  { %v863_v36 = vmax.f32 %v858_v33, 0.0  ;;  %v864_v39 = vpack.c.bf16 %v862_v34, %v860_v37  ;;  %v2504_v33 = vld [vmem:[%s3481_s8 + $0xb0] ss:$28 sps:$4 sm:$0xff]   ;;  %v2512_v34 = vld [vmem:[%s3481_s8 + $0x7c] ss:$28 sps:$4 sm:$0xff]  }
 0x14e   :  { %1761 = vmatpush1.bf16.msra.mxu0 %v2519_v13  ;;  %v2516_v37 = vld [vmem:[%s3481_s8 + $0x40] ss:$28 sps:$4 sm:$0xff]  }
 0x14f   :  { %v865_v38 = vpack.c.bf16 %v863_v36, %v861_v35  ;;  %2271 = vmatprep.subr.msk.bf16.mxu0 %vm977_vm1, %v2265_v15  ;;  %v2510_v35 = vld [vmem:[%s3481_s8 + $0x78] ss:$28 sps:$4 sm:$0xff]   ;;  %v2518_v36 = vld [vmem:[%s3481_s8 + $0x44] ss:$28 sps:$4 sm:$0xff]  }
 0x150   :  { %v2553_v15 = vld [vmem:[%s3481_s8 + $0x198] ss:$28 sps:$4 sm:$0xff]  }
 0x151   :  { %2173 = vmatprep.mubr.msk.bf16.mxu1 %vm973_vm2, %v865_v38  ;;  %v2524_v38 = vld [vmem:[%s3481_s8 + $0xc] ss:$28 sps:$4 sm:$0xff]  }
 0x152   :  { %1014 = vmatmul.mubr.bf16.vlgmr.msra.gmra.mxu1 %v864_v39  ;;  %1769 = vmatpush2.bf16.msra.mxu0 %v1726_v17  ;;  %v1232_v39 = vld [vmem:[%s3481_s8 + $0x2a8] sm:$0xff] }
 0x153   :  { %1118 = vmatprep.mubr.bf16.mxu1 %v2676_v12  ;;  %1099 = vmatpush1.bf16.msra.mxu1 %v1081_v43  ;;  %v2267_v41 = vcombine.high %v1232_v39, %v1232_v39  ;;  %v2266_v42 = vcombine.low %v1232_v39, %v1232_v39  ;;  %v2584_v39 = vld [vmem:[%s3481_s8 + $0x18] ss:$28 sps:$4 sm:$0xff]  }
 0x154   :  { %1100 = vmatprep.subr.bf16.mxu1 %v2476_v44  ;;  %1770 = vmatprep.subr.bf16.mxu0 %v2531_v18  ;;  %v2534_v44 = vld [vmem:[%s3481_s8 + $0x274] ss:$28 sps:$4 sm:$0xff]   ;;  %v2559_v18 = vld [vmem:[%s3481_s8 + $0x164] ss:$28 sps:$4 sm:$0xff]  }
 0x155   :  { %v1732_v43 = vsel %vm977_vm1, %v2266_v42, 0  ;;  %v2587_v42 = vld [vmem:[%s3481_s8 + $0x2b8] ss:$0 sps:$4 sm:$0xff]  }
 0x156   :  { %1771 = vmatpush2.bf16.msra.mxu0 %v2529_v19  ;;  %v2557_v19 = vld [vmem:[%s3481_s8 + $0x160] ss:$28 sps:$4 sm:$0xff]  }
 0x157   :  { %1101 = vmatpush1.bf16.msra.mxu1 %v2474_v45  ;;  %v2532_v45 = vld [vmem:[%s3481_s8 + $0x270] ss:$28 sps:$4 sm:$0xff]  }
 0x158   :  { %1789 = vmatprep.subr.bf16.mxu1 %v2482_v52  ;;  %v2541_v52 = vld [vmem:[%s3481_s8 + $0x1f8] ss:$28 sps:$4 sm:$0xff]  }
 0x212   :  { %v1015_v48 = vpop.f32.mrf.mxu1 }
 0x213   :  { %v1016_v51 = vadd.f32 %v2159_v46, %v1015_v48  ;;  %v2535_v48 = vld [vmem:[%s3481_s8 + $0x230] ss:$28 sps:$4 sm:$0xff]  }
 0x214   :  { %v1017_v54 = vpop.f32.mrf.mxu1 }
 0x215   :  { %2019 = vst.msk [vmem:[#allocation4] sm:$0xff] %vm2018_vm4, %v1016_v51  ;;  %v1032_v55 = vmul.f32 %v1027_v47, %v1016_v51  ;;  %v2540_v47 = vld [vmem:[%s3481_s8 + $0x23c] ss:$28 sps:$4 sm:$0xff]   ;;  %v2549_v54 = vld [vmem:[%s3481_s8 + $0x1c4] ss:$28 sps:$4 sm:$0xff]  }
 0x216   :  { %v1018_v57 = vpop.f32.mrf.mxu1 }
 0x217   :  { %v1019_v59 = vadd.f32 %v2159_v46, %v1018_v57  ;;  %1036 = vrot.lane.b32.xlu1 %v1032_v55, %s2678_s2  ;;  %v2537_v46 = vld [vmem:[%s3481_s8 + $0x234] ss:$28 sps:$4 sm:$0xff]   ;;  %v2552_v55 = vld [vmem:[%s3481_s8 + $0x1cc] ss:$28 sps:$4 sm:$0xff]  }
 0x218   :  { %v1020_v62 = vpop.f32.mrf.mxu1  ;;  %1772 = vmatprep.subr.bf16.mxu0 %v2537_v46  ;;  %v2550_v57 = vld [vmem:[%s3481_s8 + $0x1c8] ss:$28 sps:$4 sm:$0xff]   ;;  %v2588_v46 = vld [vmem:[%s3481_s8 + $0x278] ss:$28 sps:$4 sm:$0xff]  }
 0x219   :  { %2020 = vst.msk [vmem:[#allocation4 + $0x8] sm:$0xff] %vm2018_vm4, %v1019_v59  ;;  %v1033_v0 = vmul.f32 %v1029_v58, %v1019_v59  ;;  %1773 = vmatpush2.bf16.msra.mxu0 %v2535_v48  ;;  %v2555_v58 = vld [vmem:[%s3481_s8 + $0x19c] ss:$28 sps:$4 sm:$0xff]   ;;  %v2594_v48 = vld [vmem:[%s3481_s8 + $0x244] ss:$28 sps:$4 sm:$0xff]  }
 0x21a   :  { %1774 = vmatprep.subr.bf16.mxu0 %v2543_v50  ;;  %v2595_v50 = vld [vmem:[%s3481_s8 + $0x248] ss:$28 sps:$4 sm:$0xff]  }
 0x21b   :  { %1038 = vrot.lane.b32.xlu1 %v1033_v0, %s2678_s2 }
 0x21d   :  { %1775 = vmatpush2.bf16.msra.mxu0 %v2541_v52  ;;  %v2596_v52 = vld [vmem:[%s3481_s8 + $0x208] ss:$28 sps:$4 sm:$0xff]  }
 0x21e   :  { %1776 = vmatprep.subr.bf16.mxu0 %v2549_v54  ;;  %v2602_v54 = vld [vmem:[%s3481_s8 + $0x1d4] ss:$28 sps:$4 sm:$0xff]  }
 0x221   :  { %1777 = vmatpush2.bf16.msra.mxu0 %v2547_v56  ;;  %v2603_v56 = vld [vmem:[%s3481_s8 + $0x1d8] ss:$28 sps:$4 sm:$0xff]  }
 0x222   :  { %1832 = vmatprep.subr.bf16.mxu0 %v2555_v58 }
 0x289   :  { %v1037_v20 = vpop.permute.xlu1 %1036 }
 0x28a   :  { %v1042_v22 = vadd.f32 %v1037_v20, %v1016_v51  ;;  %v2546_v51 = vld [vmem:[%s3481_s8 + $0x204] ss:$28 sps:$4 sm:$0xff]  }
 0x28b   :  { %v2560_v20 = vld [vmem:[%s3481_s8 + $0x168] ss:$28 sps:$4 sm:$0xff]  }
 0x28d   :  { %v1039_v21 = vpop.permute.xlu1 %1038 }
 0x28e   :  { %v1043_v23 = vadd.f32 %v1039_v21, %v1019_v59  ;;  %v1048_v59 = vld [vmem:[%s3480_s7] sm:$0x3]  ;;  %v2563_v21 = vld [vmem:[%s3481_s8 + $0x12c] ss:$28 sps:$4 sm:$0xff]  }
 0x28f   :  { %v1057_v62 = vrot.slane %v1048_v59, %v3123_v63  ;;  %v1053_v0 = vrot.slane %v1048_v59, %v3129_v1 }
 0x290   :  { %v1044_v25 = vpack.c.bf16 %v1043_v23, %v1042_v22  ;;  %v2561_v22 = vld [vmem:[%s3481_s8 + $0x128] ss:$28 sps:$4 sm:$0xff]   ;;  %v2564_v23 = vld [vmem:[%s3481_s8 + $0x130] ss:$28 sps:$4 sm:$0xff]  }
 0x292   :  { %2179 = vmatmul.mubr.msk.bf16.vlgmr.msra.gmra.mxu1 %vm1075_vm5, %v1044_v25  ;;  %v2565_v25 = vld [vmem:[%s3481_s8 + $0xf0] ss:$28 sps:$4 sm:$0xff]  }
 0x293   :  { %1790 = vmatpush1.bf16.msra.mxu1 %v2480_v24  ;;  %v2567_v24 = vld [vmem:[%s3481_s8 + $0xf4] ss:$28 sps:$4 sm:$0xff]  }
 0x294   :  { %1791 = vmatprep.subr.bf16.mxu1 %v2488_v26  ;;  %v2568_v26 = vld [vmem:[%s3481_s8 + $0xf8] ss:$28 sps:$4 sm:$0xff]  }
 0x297   :  { %1792 = vmatpush1.bf16.msra.mxu1 %v2486_v27  ;;  %v2571_v27 = vld [vmem:[%s3481_s8 + $0xbc] ss:$28 sps:$4 sm:$0xff]  }
 0x298   :  { %1793 = vmatprep.subr.bf16.mxu1 %v2494_v28  ;;  %v2569_v28 = vld [vmem:[%s3481_s8 + $0xb8] ss:$28 sps:$4 sm:$0xff]  }
 0x29b   :  { %1794 = vmatpush1.bf16.msra.mxu1 %v2492_v29  ;;  %v2572_v29 = vld [vmem:[%s3481_s8 + $0xc0] ss:$28 sps:$4 sm:$0xff]  }
 0x29c   :  { %1795 = vmatprep.subr.bf16.mxu1 %v2500_v30  ;;  %v2575_v30 = vld [vmem:[%s3481_s8 + $0x84] ss:$28 sps:$4 sm:$0xff]  }
 0x29f   :  { %1796 = vmatpush1.bf16.msra.mxu1 %v2498_v31  ;;  %v2573_v31 = vld [vmem:[%s3481_s8 + $0x80] ss:$28 sps:$4 sm:$0xff]  }
 0x2a0   :  { %1797 = vmatprep.subr.bf16.mxu1 %v2506_v32  ;;  %v2576_v32 = vld [vmem:[%s3481_s8 + $0x88] ss:$28 sps:$4 sm:$0xff]  }
 0x2a3   :  { %1798 = vmatpush1.bf16.msra.mxu1 %v2504_v33  ;;  %v2579_v33 = vld [vmem:[%s3481_s8 + $0x4c] ss:$28 sps:$4 sm:$0xff]  }
 0x2a4   :  { %1799 = vmatprep.subr.bf16.mxu1 %v2512_v34  ;;  %v2577_v34 = vld [vmem:[%s3481_s8 + $0x48] ss:$28 sps:$4 sm:$0xff]  }
 0x2a7   :  { %1800 = vmatpush1.bf16.msra.mxu1 %v2510_v35  ;;  %v2580_v35 = vld [vmem:[%s3481_s8 + $0x50] ss:$28 sps:$4 sm:$0xff]  }
 0x2a8   :  { %1801 = vmatprep.subr.bf16.mxu1 %v2518_v36  ;;  %v2583_v36 = vld [vmem:[%s3481_s8 + $0x14] ss:$28 sps:$4 sm:$0xff]  }
 0x2ab   :  { %1802 = vmatpush1.bf16.msra.mxu1 %v2516_v37  ;;  %v1233_v37 = vld [vmem:[%s3481_s8 + $0x2b0] sm:$0xff] }
 0x2ac   :  { %1803 = vmatprep.subr.bf16.mxu1 %v2524_v38  ;;  %v2581_v38 = vld [vmem:[%s3481_s8 + $0x10] ss:$28 sps:$4 sm:$0xff]  }
 0x2af   :  { %1804 = vmatpush1.bf16.msra.mxu1 %v2522_v40  ;;  %v2269_v40 = vcombine.high %v1233_v37, %v1233_v37 }
 0x2b0   :  { %2273 = vmatprep.subr.msk.bf16.mxu1 %vm977_vm1, %v2267_v41  ;;  %v2268_v41 = vcombine.low %v1233_v37, %v1233_v37 }
 0x2b3   :  { %1812 = vmatpush2.bf16.msra.mxu1 %v1732_v43  ;;  %v1738_v43 = vsel %vm977_vm1, %v2268_v41, 0 }
 0x2b4   :  { %1813 = vmatprep.subr.bf16.mxu1 %v2534_v44  ;;  %v1744_v44 = vsel %vm977_vm1, %v2587_v42, 0 }
 0x2b7   :  { %1814 = vmatpush2.bf16.msra.mxu1 %v2532_v45  ;;  %v2590_v45 = vld [vmem:[%s3481_s8 + $0x27c] ss:$28 sps:$4 sm:$0xff]  }
 0x2b8   :  { %1815 = vmatprep.subr.bf16.mxu1 %v2540_v47  ;;  %v2591_v47 = vld [vmem:[%s3481_s8 + $0x280] ss:$28 sps:$4 sm:$0xff]  }
 0x2bb   :  { %1816 = vmatpush2.bf16.msra.mxu1 %v2538_v49  ;;  %v2592_v49 = vld [vmem:[%s3481_s8 + $0x240] ss:$28 sps:$4 sm:$0xff]  }
 0x2bc   :  { %1817 = vmatprep.subr.bf16.mxu1 %v2546_v51  ;;  %v2598_v51 = vld [vmem:[%s3481_s8 + $0x20c] ss:$28 sps:$4 sm:$0xff]  }
 0x2bf   :  { %1818 = vmatpush2.bf16.msra.mxu1 %v2544_v53  ;;  %v2599_v53 = vld [vmem:[%s3481_s8 + $0x210] ss:$28 sps:$4 sm:$0xff]  }
 0x2c0   :  { %1819 = vmatprep.subr.bf16.mxu1 %v2552_v55  ;;  %v2600_v55 = vld [vmem:[%s3481_s8 + $0x1d0] ss:$28 sps:$4 sm:$0xff]  }
 0x2c3   :  { %1820 = vmatpush2.bf16.msra.mxu1 %v2550_v57 }
 0x2c4   :  { %1875 = vmatprep.subr.bf16.mxu1 %v2676_v12 }
 0x352   :  { %v1120_v61 = vpop.f32.mrf.mxu1 }
 0x353   :  { %v1121_v6 = vadd.f32 %v1120_v61, %v1053_v0 }
 0x354   :  { %v1122_v2 = vpop.f32.mrf.mxu1 }
 0x355   :  { %v1123_v4 = vadd.f32 %v1122_v2, %v1057_v62  ;;  %v1129_v13 = vmax.f32 %v1121_v6, 0.0 }
 0x356   :  { %v1124_v3 = vpop.f32.mrf.mxu1 }
 0x357   :  { %v1125_v5 = vadd.f32 %v1124_v3, %v1053_v0  ;;  %v1130_v10 = vmax.f32 %v1123_v4, 0.0 }
 0x358   :  { %v1126_v7 = vpop.f32.mrf.mxu1 }
 0x359   :  { %v1127_v8 = vadd.f32 %v1126_v7, %v1057_v62  ;;  %v1131_v9 = vmax.f32 %v1125_v5, 0.0 }
 0x35b   :  { %v1132_v11 = vmax.f32 %v1127_v8, 0.0  ;;  %v3318_v17 = vpack.c.bf16 %v1131_v9, %v1129_v13 }
 0x35d   :  { %v1134_v14 = vpack.c.bf16 %v1132_v11, %v1130_v10 }
 0x35f   :  { %2272 = vmatprep.mubr.msk.bf16.mxu0 %vm973_vm2, %v1134_v14  ;;  %2274 = vmatprep.mubr.msk.bf16.mxu1 %vm973_vm2, %v1134_v14 }
 0x360   :  { %1779 = vmatmul.mubr.bf16.vlgmr.msra.gmra.mxu0 %v3318_v17  ;;  %1822 = vmatmul.mubr.bf16.vlgmr.msra.gmra.mxu1 %v3318_v17 }
 0x361   :  { %1833 = vmatpush1.bf16.msra.mxu0 %v2553_v15  ;;  %1876 = vmatpush1.bf16.msra.mxu1 %v2556_v16 }
 0x362   :  { %2276 = vmatprep.mubr.msk.bf16.mxu0 %vm973_vm2, %v1134_v14  ;;  %2277 = vmatprep.mubr.msk.bf16.mxu1 %vm973_vm2, %v1134_v14 }
 0x363   :  { %1834 = vmatprep.subr.bf16.mxu0 %v2559_v18  ;;  %1877 = vmatprep.subr.bf16.mxu1 %v2676_v12 }
 0x365   :  { %1835 = vmatpush1.bf16.msra.mxu0 %v2557_v19  ;;  %1878 = vmatpush1.bf16.msra.mxu1 %v2560_v20 }
 0x366   :  { %1836 = vmatprep.subr.bf16.mxu0 %v2563_v21  ;;  %1879 = vmatprep.subr.bf16.mxu1 %v2676_v12 }
 0x369   :  { %1837 = vmatpush1.bf16.msra.mxu0 %v2561_v22  ;;  %1880 = vmatpush1.bf16.msra.mxu1 %v2564_v23 }
 0x36a   :  { %1838 = vmatprep.subr.bf16.mxu0 %v2567_v24  ;;  %1881 = vmatprep.subr.bf16.mxu1 %v2676_v12 }
 0x36d   :  { %1839 = vmatpush1.bf16.msra.mxu0 %v2565_v25  ;;  %1882 = vmatpush1.bf16.msra.mxu1 %v2568_v26 }
 0x36e   :  { %1840 = vmatprep.subr.bf16.mxu0 %v2571_v27  ;;  %1883 = vmatprep.subr.bf16.mxu1 %v2676_v12 }
 0x371   :  { %1841 = vmatpush1.bf16.msra.mxu0 %v2569_v28  ;;  %1884 = vmatpush1.bf16.msra.mxu1 %v2572_v29 }
 0x372   :  { %1842 = vmatprep.subr.bf16.mxu0 %v2575_v30  ;;  %1885 = vmatprep.subr.bf16.mxu1 %v2676_v12 }
 0x375   :  { %1843 = vmatpush1.bf16.msra.mxu0 %v2573_v31  ;;  %1886 = vmatpush1.bf16.msra.mxu1 %v2576_v32 }
 0x376   :  { %1844 = vmatprep.subr.bf16.mxu0 %v2579_v33  ;;  %1887 = vmatprep.subr.bf16.mxu1 %v2676_v12 }
 0x379   :  { %1845 = vmatpush1.bf16.msra.mxu0 %v2577_v34  ;;  %1888 = vmatpush1.bf16.msra.mxu1 %v2580_v35 }
 0x37a   :  { %1846 = vmatprep.subr.bf16.mxu0 %v2583_v36  ;;  %1889 = vmatprep.subr.bf16.mxu1 %v2676_v12 }
 0x37d   :  { %1847 = vmatpush1.bf16.msra.mxu0 %v2581_v38  ;;  %1890 = vmatpush1.bf16.msra.mxu1 %v2584_v39 }
 0x37e   :  { %2275 = vmatprep.subr.msk.bf16.mxu0 %vm977_vm1, %v2269_v40  ;;  %1897 = vmatprep.subr.bf16.mxu1 %v2676_v12 }
 0x381   :  { %1855 = vmatpush2.bf16.msra.mxu0 %v1738_v43  ;;  %1898 = vmatpush2.bf16.msra.mxu1 %v1744_v44 }
 0x382   :  { %1856 = vmatprep.subr.bf16.mxu0 %v2590_v45  ;;  %1899 = vmatprep.subr.bf16.mxu1 %v2676_v12 }
 0x385   :  { %1857 = vmatpush2.bf16.msra.mxu0 %v2588_v46  ;;  %1900 = vmatpush2.bf16.msra.mxu1 %v2591_v47 }
 0x386   :  { %1858 = vmatprep.subr.bf16.mxu0 %v2594_v48  ;;  %1901 = vmatprep.subr.bf16.mxu1 %v2676_v12 }
 0x389   :  { %1859 = vmatpush2.bf16.msra.mxu0 %v2592_v49  ;;  %1902 = vmatpush2.bf16.msra.mxu1 %v2595_v50 }
 0x38a   :  { %1860 = vmatprep.subr.bf16.mxu0 %v2598_v51  ;;  %1903 = vmatprep.subr.bf16.mxu1 %v2676_v12 }
 0x38d   :  { %1861 = vmatpush2.bf16.msra.mxu0 %v2596_v52  ;;  %1904 = vmatpush2.bf16.msra.mxu1 %v2599_v53 }
 0x38e   :  { %1862 = vmatprep.subr.bf16.mxu0 %v2602_v54  ;;  %1905 = vmatprep.subr.bf16.mxu1 %v2676_v12 }
 0x391   :  { %1863 = vmatpush2.bf16.msra.mxu0 %v2600_v55  ;;  %1906 = vmatpush2.bf16.msra.mxu1 %v2603_v56 }
 0x394   :  { %1865 = vmatmul.mubr.bf16.vlgmr.msra.gmra.mxu0 %v3318_v17  ;;  %1908 = vmatmul.mubr.bf16.vlgmr.msra.gmra.mxu1 %v3318_v17 }
 0x395   :  { %2643 = shalt.err (!%p2640_p4)
}
 0x396   :  { %s2680_s8 = smov 128   ;;  %s2681_s30 = smov 8   ;;  %v1247_v12 = vsub.s32 2, %v3120_v60  ;;  %v3455_v57 = vld [vmem:[%s3482_s9] sm:$0x7f]  ;;  %v1251_v58 = vsub.s32 3, %v3120_v60 }
 0x397   :  { %2044 = dma.vmem_to_hbm [thread:$0]  %s2039_s28, 256, %s3484_s11, [#allocation5], %s2680_s8, %s2680_s8, %s2681_s30   ;;  %v1240_v62 = vrot.slane %v3455_v57, %v3129_v1  ;;  %v1244_v2 = vrot.slane %v3455_v57, %v3123_v63  ;;  %v1255_v45 = vsub.s32 4, %v3120_v60  ;;  %v1263_v46 = vsub.s32 6, %v3120_v60 }
 0x398   :  { %v1248_v0 = vrot.slane %v3455_v57, %v1247_v12  ;;  %v1252_v4 = vrot.slane %v3455_v57, %v1251_v58  ;;  %v1259_v47 = vsub.s32 5, %v3120_v60  ;;  %s2682_s9 = smov [#allocation2]   ;;  %vm2012_vm6 = vcmask 125952  }
 0x399   :  { %v1256_v50 = vrot.slane %v3455_v57, %v1255_v45  ;;  %v1264_v51 = vrot.slane %v3455_v57, %v1263_v46  ;;  %s2026_s11 = sshll.u32 %s2682_s9, 4  ;;  %s2027_s11 = int_to_ptr.vmem [resolvable:$true] %s2026_s11 }
 0x39a   :  { %v1260_v54 = vrot.slane %v3455_v57, %v1259_v47  ;;  %s2652_s16 = scalar_lea.vmem %s2027_s11, 896  ;;  %p2657_p6 = scmp.lt.s32.totalorder %s2027_s11, %s2027_s11 }
 0x39b   :  { %p2653_p5 = scmp.ne.s32.totalorder %s2027_s11, %s2652_s16  ;;  %p2658_p7 = scmp.lt.s32.totalorder %s2652_s16, %s2652_s16 }
 0x39d   :  { %p2659_p8 = por %p2658_p7, %p2657_p6 }
 0x39f   :  { %p2660_p9 = pnand %p2659_p8, %p2653_p5 }
 0x420   :  { %v1780_v59 = vpop.f32.mrf.mxu0  ;;  %v1823_v61 = vpop.f32.mrf.mxu1 }
 0x421   :  { %v1781_v8 = vadd.f32 %v1780_v59, %v1240_v62  ;;  %v1824_v9 = vadd.f32 %v1823_v61, %v1248_v0 }
 0x422   :  { %v1782_v3 = vpop.f32.mrf.mxu0  ;;  %v1825_v5 = vpop.f32.mrf.mxu1 }
 0x423   :  { %v1783_v13 = vadd.f32 %v1782_v3, %v1244_v2  ;;  %v1826_v14 = vadd.f32 %v1825_v5, %v1252_v4 }
 0x424   :  { %v1784_v6 = vpop.f32.mrf.mxu0  ;;  %v1827_v7 = vpop.f32.mrf.mxu1 }
 0x425   :  { %v1785_v10 = vadd.f32 %v1784_v6, %v1240_v62  ;;  %v1828_v11 = vadd.f32 %v1827_v7, %v1248_v0 }
 0x426   :  { %v1786_v15 = vpop.f32.mrf.mxu0  ;;  %v1829_v16 = vpop.f32.mrf.mxu1 }
 0x427   :  { %v1916_v1 = vpack.c.bf16 %v1785_v10, %v1781_v8  ;;  %v1918_v17 = vpack.c.bf16 %v1828_v11, %v1824_v9  ;;  %v1787_v18 = vadd.f32 %v1786_v15, %v1244_v2  ;;  %v1830_v19 = vadd.f32 %v1829_v16, %v1252_v4 }
 0x429   :  { %v2278_v20 = vmul.bf16 3216621497, %v1916_v1  ;;  %v2280_v63 = vmul.bf16 3216621497, %v1918_v17  ;;  %v1917_v21 = vpack.c.bf16 %v1787_v18, %v1783_v13  ;;  %v1919_v22 = vpack.c.bf16 %v1830_v19, %v1826_v14 }
 0x42b   :  { %2604 = vpow.bf16 %v2278_v20  ;;  %v2279_v23 = vmul.bf16 3216621497, %v1917_v21  ;;  %v2281_v24 = vmul.bf16 3216621497, %v1919_v22 }
 0x42c   :  { %2606 = vpow.bf16 %v2280_v63 }
 0x42d   :  { %2608 = vpow.bf16 %v2279_v23 }
 0x42e   :  { %2610 = vpow.bf16 %v2281_v24 }
 0x439   :  { %v2605_v25 = vpop.eup %2604 }
 0x43a   :  { %v2607_v26 = vpop.eup %2606  ;;  %v1951_v27 = vadd.bf16 1065369472, %v2605_v25 }
 0x43b   :  { %v2609_v28 = vpop.eup %2608  ;;  %v1953_v29 = vadd.bf16 1065369472, %v2607_v26 }
 0x43c   :  { %v2611_v30 = vpop.eup %2610  ;;  %2612 = vrcp.bf16 %v1951_v27  ;;  %v1952_v31 = vadd.bf16 1065369472, %v2609_v28 }
 0x43d   :  { %2614 = vrcp.bf16 %v1953_v29  ;;  %v1954_v32 = vadd.bf16 1065369472, %v2611_v30 }
 0x43e   :  { %2616 = vrcp.bf16 %v1952_v31 }
 0x43f   :  { %2618 = vrcp.bf16 %v1954_v32 }
 0x44a   :  { %v2613_v33 = vpop.eup %2612 }
 0x44b   :  { %v2615_v34 = vpop.eup %2614  ;;  %v1959_v37 = vmul.bf16 1065369472, %v2613_v33 }
 0x44c   :  { %v2617_v35 = vpop.eup %2616  ;;  %v1963_v39 = vmul.bf16 1065369472, %v2615_v34 }
 0x44d   :  { %v2619_v36 = vpop.eup %2618  ;;  %v1961_v38 = vmul.bf16 1065369472, %v2617_v35 }
 0x44e   :  { %v1965_v40 = vmul.bf16 1065369472, %v2619_v36 }
 0x44f   :  { %v2285_v41 = vcombine.low %v1959_v37, %v1961_v38  ;;  %v2289_v42 = vcombine.high %v1959_v37, %v1961_v38 }
 0x450   :  { %v2286_v43 = vcombine.low %v1963_v39, %v1965_v40  ;;  %v2290_v44 = vcombine.high %v1963_v39, %v1965_v40 }
 0x451   :  { %2009 = vst [vmem:[#allocation2] sm:$0xff] %v2285_v41  ;;  %2014 = vst [vmem:[#allocation2 + $0x1c] sm:$0xff] %v2289_v42 }
 0x452   :  { %2010 = vst [vmem:[#allocation2 + $0x8] sm:$0xff] %v2286_v43  ;;  %2015 = vst [vmem:[#allocation2 + $0x24] sm:$0xff] %v2290_v44 }
 0x454   :  { %v1866_v48 = vpop.f32.mrf.mxu0  ;;  %v1909_v49 = vpop.f32.mrf.mxu1 }
 0x455   :  { %v1867_v12 = vadd.f32 %v1866_v48, %v1256_v50  ;;  %v1910_v58 = vadd.f32 %v1909_v49, %v1264_v51 }
 0x456   :  { %v1868_v52 = vpop.f32.mrf.mxu0  ;;  %v1911_v53 = vpop.f32.mrf.mxu1 }
 0x457   :  { %v1869_v2 = vadd.f32 %v1868_v52, %v1260_v54 }
 0x458   :  { %v1870_v55 = vpop.f32.mrf.mxu0  ;;  %v1912_v56 = vpop.f32.mrf.mxu1 }
 0x459   :  { %v1871_v59 = vadd.f32 %v1870_v55, %v1256_v50  ;;  %v1913_v61 = vadd.f32 %v1912_v56, %v1264_v51 }
 0x45a   :  { %v1872_v62 = vpop.f32.mrf.mxu0  ;;  %v1914_v0 = vpop.f32.mrf.mxu1 }
 0x45b   :  { %v1920_v60 = vpack.c.bf16 %v1871_v59, %v1867_v12  ;;  %v1922_v3 = vpack.c.bf16 %v1913_v61, %v1910_v58  ;;  %v1873_v4 = vadd.f32 %v1872_v62, %v1260_v54 }
 0x45d   :  { %v2282_v5 = vmul.bf16 3216621497, %v1920_v60  ;;  %v2284_v6 = vmul.bf16 3216621497, %v1922_v3  ;;  %v1921_v7 = vpack.c.bf16 %v1873_v4, %v1869_v2 }
 0x45f   :  { %2620 = vpow.bf16 %v2282_v5  ;;  %v2283_v8 = vmul.bf16 3216621497, %v1921_v7 }
 0x460   :  { %2622 = vpow.bf16 %v2284_v6 }
 0x461   :  { %2624 = vpow.bf16 %v2283_v8 }
 0x46d   :  { %v2621_v57 = vpop.eup %2620 }
 0x46e   :  { %v2623_v9 = vpop.eup %2622  ;;  %v1955_v10 = vadd.bf16 1065369472, %v2621_v57 }
 0x46f   :  { %v2625_v11 = vpop.eup %2624  ;;  %v1957_v13 = vadd.bf16 1065369472, %v2623_v9 }
 0x470   :  { %2626 = vrcp.bf16 %v1955_v10  ;;  %v1956_v14 = vadd.bf16 1065369472, %v2625_v11 }
 0x471   :  { %2628 = vrcp.bf16 %v1957_v13 }
 0x472   :  { %2630 = vrcp.bf16 %v1956_v14 }
 0x47e   :  { %v2627_v15 = vpop.eup %2626 }
 0x47f   :  { %v2629_v16 = vpop.eup %2628  ;;  %v1967_v18 = vmul.bf16 1065369472, %v2627_v15 }
 0x480   :  { %v2631_v1 = vpop.eup %2630  ;;  %v1971_v17 = vmul.bf16 1065369472, %v2629_v16 }
 0x481   :  { %v1969_v19 = vmul.bf16 1065369472, %v2631_v1 }
 0x482   :  { %v2288_v20 = vcombine.low %v1971_v17, %v1971_v17  ;;  %v2292_v63 = vcombine.high %v1971_v17, %v1971_v17 }
 0x483   :  { %v2287_v21 = vcombine.low %v1967_v18, %v1969_v19  ;;  %v2291_v22 = vcombine.high %v1967_v18, %v1969_v19 }
 0x484   :  { %2013 = vst.msk [vmem:[#allocation2 + $0x18] sm:$0xf] %vm2012_vm6, %v2288_v20  ;;  %2017 = vst.msk [vmem:[#allocation2 + $0x34] sm:$0xf] %vm2012_vm6, %v2292_v63 }
 0x485   :  { %2011 = vst [vmem:[#allocation2 + $0x10] sm:$0xff] %v2287_v21  ;;  %2016 = vst [vmem:[#allocation2 + $0x2c] sm:$0xff] %v2291_v22 }
 0x486   :  { %2663 = shalt.err (!%p2660_p9)
}
 0x487   :  { %s2683_s7 = smov 448   ;;  %s2684_s17 = smov 28  }
 0x488   :  { %2032 = dma.vmem_to_hbm [thread:$0]  %s2027_s11, 896, %s3483_s10, [#allocation3], %s2683_s7, %s2683_s7, %s2684_s17  }
 0x489   :  { %2672 = dma.done.wait [#allocation3], 896  }
 0x48a   :  { %2673 = vsyncadd [#allocation3], 4294966400 }
 0x48b   :  { %2674 = dma.done.wait [#allocation5], 256  }
 0x48c   :  { %2675 = vsyncadd [#allocation5], 4294967040 }
 0x48d   :  { %2051 = vsyncpa [#allocation3], 1 }
 0x48e   :  { %2052 = vsyncpa [#allocation5], 1 }

</bundles_post_ra>
